<compile_context>
chip_gen: v5e
topology: v5e:2x2
jax: 0.10.0
libtpu: 0.0.40
codegen_flags: <defaults>
</compile_context>

<pallas_src>
import functools

import jax
import jax.numpy as jnp
from jax.experimental import pallas as pl
from jax.experimental.pallas import tpu as pltpu

LEAKY_SLOPE = 0.1


# ------------------------------ fused kernel ---------------------------------

def _fused_flow_kernel(x_ref, w1_ref, b1_ref, w2_ref, b2_ref, o_ref, *,
                       N, Cin, hidden, cout, H, W):
    """Fused conv3x3+LeakyReLU -> conv3x3 for the whole (small) batch.

    x_ref : (N, Cin, H*W)     f32   NCHW with spatial flattened onto lanes
    w1_ref: (hidden, 9*Cin)   bf16  columns ordered t*Cin + c, t = dy*3 + dx
    b1_ref: (hidden, 1)       f32
    w2_ref: (cout, 9*hidden)  bf16
    b2_ref: (cout, 1)         f32
    o_ref : (N, cout, H*W)    f32   (lane-dense store: H*W on the lane axis)
    """
    S = H * W
    P = W + 1                           # halo reach in flattened-lane coords

    # Column-validity masks for the left / right taps (dx = 0 / 2).  The row
    # (dy) halo is handled entirely by the zero lane-padding below.
    col = jax.lax.broadcasted_iota(jnp.int32, (1, S), 1) % W
    mask_l = col >= 1                   # dx == 0 needs x-1 >= 0
    mask_r = col <= W - 2               # dx == 2 needs x+1 <= W-1

    w1 = w1_ref[...]                    # (hidden, 9*Cin)   bf16
    w2 = w2_ref[...]                    # (cout, 9*hidden)  bf16
    b1 = b1_ref[...]                    # (hidden, 1)       f32
    b2 = b2_ref[...]                    # (cout, 1)         f32

    def im2col(feat):
        """(C, S) f32 -> (9*C, S) bf16 patch matrix for a 3x3 'same' conv."""
        C = feat.shape[0]
        zpad = jnp.zeros((C, P), feat.dtype)
        padded = jnp.concatenate([zpad, feat, zpad], axis=1)    # (C, S + 2P)
        taps = []
        for dy in range(3):
            for dx in range(3):
                start = P + (dy - 1) * W + (dx - 1)             # static slice
                sl = padded[:, start:start + S]
                if dx == 0:
                    sl = jnp.where(mask_l, sl, 0.0)
                elif dx == 2:
                    sl = jnp.where(mask_r, sl, 0.0)
                taps.append(sl)
        return jnp.concatenate(taps, axis=0).astype(jnp.bfloat16)

    for n in range(N):                  # static loop; whole batch in one step
        x_n = x_ref[n]                                          # (Cin, S) f32
        p1 = im2col(x_n)                                        # (9*Cin, S)
        h = jnp.dot(w1, p1, preferred_element_type=jnp.float32) + b1
        h = jnp.where(h >= 0, h, LEAKY_SLOPE * h)               # f32 epilogue
        p2 = im2col(h)                                          # (9*hidden, S)
        flow = jnp.dot(w2, p2, preferred_element_type=jnp.float32) + b2
        o_ref[n] = flow.astype(o_ref.dtype)                     # lane-dense


# ------------------------------- wrapper --------------------------------------

def _oihw_to_flat(w_oihw):
    """PyTorch (Cout, Cin, 3, 3) -> (Cout, 9*Cin) with column t*Cin + c."""
    o, i, kh, kw = w_oihw.shape
    return jnp.transpose(w_oihw, (0, 2, 3, 1)).reshape(o, kh * kw * i)


def fused_flow_forward(params, data_nchw):
    """ModelAndLoss.forward(data): output = self.model(data); return output."""
    N, Cin, H, W = data_nchw.shape
    S = H * W                            # 256 here: multiple of 128 (lane-dense)
    hidden = params["w1_flat"].shape[0]
    cout = params["w2_flat"].shape[0]
    x = data_nchw.reshape(N, Cin, S)     # free reshape, no transpose

    kernel = functools.partial(_fused_flow_kernel, N=N, Cin=Cin,
                               hidden=hidden, cout=cout, H=H, W=W)
    flow = pl.pallas_call(
        kernel,
        out_shape=jax.ShapeDtypeStruct((N, cout, S), jnp.float32),
        grid_spec=pltpu.PrefetchScalarGridSpec(
            num_scalar_prefetch=0,
            grid=(1,),                   # whole batch handled per grid step
            in_specs=[
                pl.BlockSpec((N, Cin, S), lambda i: (0, 0, 0)),
                pl.BlockSpec((hidden, 9 * Cin), lambda i: (0, 0)),
                pl.BlockSpec((hidden, 1), lambda i: (0, 0)),
                pl.BlockSpec((cout, 9 * hidden), lambda i: (0, 0)),
                pl.BlockSpec((cout, 1), lambda i: (0, 0)),
            ],
            out_specs=pl.BlockSpec((N, cout, S), lambda i: (0, 0, 0)),
        ),
        compiler_params=pltpu.CompilerParams(
            dimension_semantics=("arbitrary",),
            vmem_limit_bytes=32 * 1024 * 1024,
        ),
    )(x, params["w1_flat"], params["b1_col"], params["w2_flat"], params["b2_col"])
    return flow.reshape(N, cout, H, W)   # free reshape back to NCHW


# ----------------------------- parameters -------------------------------------

def init_params(key, cin=6, hidden=32, cflow=2):
    k1, k2, k3, k4 = jax.random.split(key, 4)
    bound1 = 1.0 / jnp.sqrt(cin * 9)
    w1_oihw = jax.random.uniform(k1, (hidden, cin, 3, 3), jnp.float32, -bound1, bound1)
    b1 = jax.random.uniform(k2, (hidden,), jnp.float32, -bound1, bound1)
    bound2 = 1.0 / jnp.sqrt(hidden * 9)
    w2_oihw = jax.random.uniform(k3, (cflow, hidden, 3, 3), jnp.float32, -bound2, bound2)
    b2 = jax.random.uniform(k4, (cflow,), jnp.float32, -bound2, bound2)
    return {
        # PyTorch-layout originals (used by the references)
        "w1_oihw": w1_oihw, "b1": b1,
        "w2_oihw": w2_oihw, "b2": b2,
        # Kernel-layout weights: bf16 matmul operands, f32 bias columns
        "w1_flat": _oihw_to_flat(w1_oihw).astype(jnp.bfloat16),
        "b1_col": b1[:, None],
        "w2_flat": _oihw_to_flat(w2_oihw).astype(jnp.bfloat16),
        "b2_col": b2[:, None],
    }


# ------------------------------ references ------------------------------------

def _conv_ref_nchw(x, w_oihw, b, leaky):
    y = jax.lax.conv_general_dilated(
        x, w_oihw, window_strides=(1, 1), padding="SAME",
        dimension_numbers=("NCHW", "OIHW", "NCHW"),
        precision=jax.lax.Precision.HIGHEST)
    y = y + b[None, :, None, None]
    if leaky:
        y = jnp.where(y >= 0, y, LEAKY_SLOPE * y)
    return y


def reference_forward_f32(params, data):
    h = _conv_ref_nchw(data, params["w1_oihw"], params["b1"], leaky=True)
    return _conv_ref_nchw(h, params["w2_oihw"], params["b2"], leaky=False)


def reference_forward_bf16(params, data):
    # Mirrors kernel numerics: bf16 matmul operands, f32 accumulate/epilogue.
    q = lambda a: a.astype(jnp.bfloat16).astype(jnp.float32)
    h = _conv_ref_nchw(q(data), q(params["w1_oihw"]), params["b1"], leaky=True)
    return _conv_ref_nchw(q(h), q(params["w2_oihw"]), params["b2"], leaky=False)


# --------------------------------- main ----------------------------------------

if __name__ == "__main__":
    key = jax.random.PRNGKey(0)
    pkey, dkey = jax.random.split(key)

    N, CIN, H, W = 2, 6, 16, 16          # two stacked RGB frames, 16x16
    params = init_params(pkey, cin=CIN, hidden=32, cflow=2)
    data = jax.random.normal(dkey, (N, CIN, H, W), jnp.float32)

    flow = jax.jit(fused_flow_forward)(params, data)
    flow = jax.block_until_ready(flow)
    assert flow.shape == (N, 2, H, W), flow.shape

    # Structural check vs a reference with matching (bf16-operand) numerics.
    ref_bf16 = jax.block_until_ready(reference_forward_bf16(params, data))
    assert jnp.allclose(flow, ref_bf16, rtol=5e-3, atol=5e-3), (
        float(jnp.max(jnp.abs(flow - ref_bf16))))

    # End-to-end check vs the full-f32 reference (tolerance covers bf16 operands).
    ref_f32 = jax.block_until_ready(reference_forward_f32(params, data))
    assert jnp.allclose(flow, ref_f32, rtol=5e-2, atol=5e-2), (
        float(jnp.max(jnp.abs(flow - ref_f32))))

    print("KERNEL_OK")
</pallas_src>

<mosaic_0001>
module attributes {stable_mosaic.version = 11 : i64} {
  func.func @_fused_flow_kernel(%arg0: i32, %arg1: memref<2x6x256xf32, #tpu.memory_space<vmem>>, %arg2: memref<32x54xbf16, #tpu.memory_space<vmem>>, %arg3: memref<32x1xf32, #tpu.memory_space<vmem>>, %arg4: memref<2x288xbf16, #tpu.memory_space<vmem>>, %arg5: memref<2x1xf32, #tpu.memory_space<vmem>>, %arg6: memref<2x2x256xf32, #tpu.memory_space<vmem>>) attributes {dimension_semantics = [#tpu.dimension_semantics<arbitrary>], iteration_bounds = array<i64: 1>, scalar_prefetch = 0 : i64, scratch_operands = 0 : i64, tpu.core_type = #tpu.core_type<tc>, window_params = [{pipeline_mode = #tpu.pipeline_mode<synchronous>, transform_indices = @transform_0, window_bounds = array<i64: 2, 6, 256>}, {pipeline_mode = #tpu.pipeline_mode<synchronous>, transform_indices = @transform_1, window_bounds = array<i64: 32, 54>}, {pipeline_mode = #tpu.pipeline_mode<synchronous>, transform_indices = @transform_2, window_bounds = array<i64: 32, 1>}, {pipeline_mode = #tpu.pipeline_mode<synchronous>, transform_indices = @transform_3, window_bounds = array<i64: 2, 288>}, {pipeline_mode = #tpu.pipeline_mode<synchronous>, transform_indices = @transform_4, window_bounds = array<i64: 2, 1>}, {pipeline_mode = #tpu.pipeline_mode<synchronous>, transform_indices = @transform_5, window_bounds = array<i64: 2, 2, 256>}]} {
    %0 = tpu.iota {dimensions = array<i32: 1>} : vector<1x256xi32>
    %c16_i32 = arith.constant 16 : i32
    %c0_i32 = arith.constant 0 : i32
    %1 = arith.cmpi eq, %c16_i32, %c0_i32 : i32
    %c1_i32 = arith.constant 1 : i32
    %2 = arith.select %1, %c1_i32, %c16_i32 : i32
    %3 = vector.broadcast %2 : i32 to vector<1x256xi32>
    %4 = arith.remsi %0, %3 : vector<1x256xi32>
    %c0_i32_0 = arith.constant 0 : i32
    %5 = vector.broadcast %c0_i32_0 : i32 to vector<1x256xi32>
    %6 = arith.cmpi ne, %4, %5 : vector<1x256xi32>
    %c0_i32_1 = arith.constant 0 : i32
    %7 = vector.broadcast %c0_i32_1 : i32 to vector<1x256xi32>
    %8 = arith.cmpi slt, %4, %7 : vector<1x256xi32>
    %c0_i32_2 = arith.constant 0 : i32
    %9 = arith.cmpi slt, %2, %c0_i32_2 : i32
    %10 = vector.broadcast %9 : i1 to vector<1x256xi1>
    %11 = vector.broadcast %10 : vector<1x256xi1> to vector<1x256xi1>
    %12 = arith.xori %8, %11 : vector<1x256xi1>
    %13 = arith.andi %12, %6 : vector<1x256xi1>
    %14 = vector.broadcast %2 : i32 to vector<1x256xi32>
    %15 = arith.addi %4, %14 : vector<1x256xi32>
    %16 = arith.select %13, %15, %4 : vector<1x256xi1>, vector<1x256xi32>
    %c1_i32_3 = arith.constant 1 : i32
    %17 = vector.broadcast %c1_i32_3 : i32 to vector<1x256xi32>
    %18 = arith.cmpi sge, %16, %17 : vector<1x256xi32>
    %c14_i32 = arith.constant 14 : i32
    %19 = vector.broadcast %c14_i32 : i32 to vector<1x256xi32>
    %20 = arith.cmpi sle, %16, %19 : vector<1x256xi32>
    %c0 = arith.constant 0 : index
    %c0_4 = arith.constant 0 : index
    %21 = vector.load %arg2[%c0, %c0_4] : memref<32x54xbf16, #tpu.memory_space<vmem>>, vector<32x54xbf16>
    %c0_5 = arith.constant 0 : index
    %c0_6 = arith.constant 0 : index
    %22 = vector.load %arg4[%c0_5, %c0_6] : memref<2x288xbf16, #tpu.memory_space<vmem>>, vector<2x288xbf16>
    %c0_7 = arith.constant 0 : index
    %c0_8 = arith.constant 0 : index
    %23 = vector.load %arg3[%c0_7, %c0_8] : memref<32x1xf32, #tpu.memory_space<vmem>>, vector<32x1xf32>
    %c0_9 = arith.constant 0 : index
    %c0_10 = arith.constant 0 : index
    %24 = vector.load %arg5[%c0_9, %c0_10] : memref<2x1xf32, #tpu.memory_space<vmem>>, vector<2x1xf32>
    %c0_11 = arith.constant 0 : index
    %c0_12 = arith.constant 0 : index
    %c0_13 = arith.constant 0 : index
    %25 = vector.load %arg1[%c0_11, %c0_12, %c0_13] : memref<2x6x256xf32, #tpu.memory_space<vmem>>, vector<1x6x256xf32>
    %26 = vector.shape_cast %25 : vector<1x6x256xf32> to vector<6x256xf32>
    %cst = arith.constant 0.000000e+00 : f32
    %27 = vector.broadcast %cst : f32 to vector<6x17xf32>
    %28 = tpu.concatenate %27, %26, %27 in 1 : vector<6x17xf32>, vector<6x256xf32>, vector<6x17xf32> -> vector<6x290xf32>
    %29 = vector.extract_strided_slice %28 {offsets = [0, 0], sizes = [6, 256], strides = [1, 1]} : vector<6x290xf32> to vector<6x256xf32>
    %cst_14 = arith.constant 0.000000e+00 : f32
    %30 = vector.shape_cast %18 : vector<1x256xi1> to vector<1x256xi1>
    %31 = vector.broadcast %30 : vector<1x256xi1> to vector<6x256xi1>
    %32 = vector.broadcast %cst_14 : f32 to vector<6x256xf32>
    %33 = arith.select %31, %29, %32 : vector<6x256xi1>, vector<6x256xf32>
    %34 = vector.extract_strided_slice %28 {offsets = [0, 1], sizes = [6, 256], strides = [1, 1]} : vector<6x290xf32> to vector<6x256xf32>
    %35 = vector.extract_strided_slice %28 {offsets = [0, 2], sizes = [6, 256], strides = [1, 1]} : vector<6x290xf32> to vector<6x256xf32>
    %cst_15 = arith.constant 0.000000e+00 : f32
    %36 = vector.shape_cast %20 : vector<1x256xi1> to vector<1x256xi1>
    %37 = vector.broadcast %36 : vector<1x256xi1> to vector<6x256xi1>
    %38 = vector.broadcast %cst_15 : f32 to vector<6x256xf32>
    %39 = arith.select %37, %35, %38 : vector<6x256xi1>, vector<6x256xf32>
    %40 = vector.extract_strided_slice %28 {offsets = [0, 16], sizes = [6, 256], strides = [1, 1]} : vector<6x290xf32> to vector<6x256xf32>
    %cst_16 = arith.constant 0.000000e+00 : f32
    %41 = vector.shape_cast %18 : vector<1x256xi1> to vector<1x256xi1>
    %42 = vector.broadcast %41 : vector<1x256xi1> to vector<6x256xi1>
    %43 = vector.broadcast %cst_16 : f32 to vector<6x256xf32>
    %44 = arith.select %42, %40, %43 : vector<6x256xi1>, vector<6x256xf32>
    %45 = vector.extract_strided_slice %28 {offsets = [0, 17], sizes = [6, 256], strides = [1, 1]} : vector<6x290xf32> to vector<6x256xf32>
    %46 = vector.extract_strided_slice %28 {offsets = [0, 18], sizes = [6, 256], strides = [1, 1]} : vector<6x290xf32> to vector<6x256xf32>
    %cst_17 = arith.constant 0.000000e+00 : f32
    %47 = vector.shape_cast %20 : vector<1x256xi1> to vector<1x256xi1>
    %48 = vector.broadcast %47 : vector<1x256xi1> to vector<6x256xi1>
    %49 = vector.broadcast %cst_17 : f32 to vector<6x256xf32>
    %50 = arith.select %48, %46, %49 : vector<6x256xi1>, vector<6x256xf32>
    %51 = vector.extract_strided_slice %28 {offsets = [0, 32], sizes = [6, 256], strides = [1, 1]} : vector<6x290xf32> to vector<6x256xf32>
    %cst_18 = arith.constant 0.000000e+00 : f32
    %52 = vector.shape_cast %18 : vector<1x256xi1> to vector<1x256xi1>
    %53 = vector.broadcast %52 : vector<1x256xi1> to vector<6x256xi1>
    %54 = vector.broadcast %cst_18 : f32 to vector<6x256xf32>
    %55 = arith.select %53, %51, %54 : vector<6x256xi1>, vector<6x256xf32>
    %56 = vector.extract_strided_slice %28 {offsets = [0, 33], sizes = [6, 256], strides = [1, 1]} : vector<6x290xf32> to vector<6x256xf32>
    %57 = vector.extract_strided_slice %28 {offsets = [0, 34], sizes = [6, 256], strides = [1, 1]} : vector<6x290xf32> to vector<6x256xf32>
    %cst_19 = arith.constant 0.000000e+00 : f32
    %58 = vector.shape_cast %20 : vector<1x256xi1> to vector<1x256xi1>
    %59 = vector.broadcast %58 : vector<1x256xi1> to vector<6x256xi1>
    %60 = vector.broadcast %cst_19 : f32 to vector<6x256xf32>
    %61 = arith.select %59, %57, %60 : vector<6x256xi1>, vector<6x256xf32>
    %62 = tpu.concatenate %33, %34, %39, %44, %45, %50, %55, %56, %61 in 0 : vector<6x256xf32>, vector<6x256xf32>, vector<6x256xf32>, vector<6x256xf32>, vector<6x256xf32>, vector<6x256xf32>, vector<6x256xf32>, vector<6x256xf32>, vector<6x256xf32> -> vector<54x256xf32>
    %63 = arith.truncf %62 : vector<54x256xf32> to vector<54x256xbf16>
    %cst_20 = arith.constant dense<0.000000e+00> : vector<32x256xf32>
    %64 = tpu.matmul %21, %63, %cst_20 {dimension_numbers = #tpu.dot_dimension_numbers<[1], [0], [0], [1], [0, 0, 1, 1], [], []>} : vector<32x54xbf16>, vector<54x256xbf16>, vector<32x256xf32> -> vector<32x256xf32>
    %65 = vector.broadcast %23 : vector<32x1xf32> to vector<32x256xf32>
    %66 = arith.addf %64, %65 : vector<32x256xf32>
    %cst_21 = arith.constant 0.000000e+00 : f32
    %67 = vector.broadcast %cst_21 : f32 to vector<32x256xf32>
    %68 = arith.cmpf oge, %66, %67 : vector<32x256xf32>
    %cst_22 = arith.constant 1.000000e-01 : f32
    %69 = vector.broadcast %cst_22 : f32 to vector<32x256xf32>
    %70 = arith.mulf %69, %66 : vector<32x256xf32>
    %71 = arith.select %68, %66, %70 : vector<32x256xi1>, vector<32x256xf32>
    %cst_23 = arith.constant 0.000000e+00 : f32
    %72 = vector.broadcast %cst_23 : f32 to vector<32x17xf32>
    %73 = tpu.concatenate %72, %71, %72 in 1 : vector<32x17xf32>, vector<32x256xf32>, vector<32x17xf32> -> vector<32x290xf32>
    %74 = vector.extract_strided_slice %73 {offsets = [0, 0], sizes = [32, 256], strides = [1, 1]} : vector<32x290xf32> to vector<32x256xf32>
    %cst_24 = arith.constant 0.000000e+00 : f32
    %75 = vector.shape_cast %18 : vector<1x256xi1> to vector<1x256xi1>
    %76 = vector.broadcast %75 : vector<1x256xi1> to vector<32x256xi1>
    %77 = vector.broadcast %cst_24 : f32 to vector<32x256xf32>
    %78 = arith.select %76, %74, %77 : vector<32x256xi1>, vector<32x256xf32>
    %79 = vector.extract_strided_slice %73 {offsets = [0, 1], sizes = [32, 256], strides = [1, 1]} : vector<32x290xf32> to vector<32x256xf32>
    %80 = vector.extract_strided_slice %73 {offsets = [0, 2], sizes = [32, 256], strides = [1, 1]} : vector<32x290xf32> to vector<32x256xf32>
    %cst_25 = arith.constant 0.000000e+00 : f32
    %81 = vector.shape_cast %20 : vector<1x256xi1> to vector<1x256xi1>
    %82 = vector.broadcast %81 : vector<1x256xi1> to vector<32x256xi1>
    %83 = vector.broadcast %cst_25 : f32 to vector<32x256xf32>
    %84 = arith.select %82, %80, %83 : vector<32x256xi1>, vector<32x256xf32>
    %85 = vector.extract_strided_slice %73 {offsets = [0, 16], sizes = [32, 256], strides = [1, 1]} : vector<32x290xf32> to vector<32x256xf32>
    %cst_26 = arith.constant 0.000000e+00 : f32
    %86 = vector.shape_cast %18 : vector<1x256xi1> to vector<1x256xi1>
    %87 = vector.broadcast %86 : vector<1x256xi1> to vector<32x256xi1>
    %88 = vector.broadcast %cst_26 : f32 to vector<32x256xf32>
    %89 = arith.select %87, %85, %88 : vector<32x256xi1>, vector<32x256xf32>
    %90 = vector.extract_strided_slice %73 {offsets = [0, 17], sizes = [32, 256], strides = [1, 1]} : vector<32x290xf32> to vector<32x256xf32>
    %91 = vector.extract_strided_slice %73 {offsets = [0, 18], sizes = [32, 256], strides = [1, 1]} : vector<32x290xf32> to vector<32x256xf32>
    %cst_27 = arith.constant 0.000000e+00 : f32
    %92 = vector.shape_cast %20 : vector<1x256xi1> to vector<1x256xi1>
    %93 = vector.broadcast %92 : vector<1x256xi1> to vector<32x256xi1>
    %94 = vector.broadcast %cst_27 : f32 to vector<32x256xf32>
    %95 = arith.select %93, %91, %94 : vector<32x256xi1>, vector<32x256xf32>
    %96 = vector.extract_strided_slice %73 {offsets = [0, 32], sizes = [32, 256], strides = [1, 1]} : vector<32x290xf32> to vector<32x256xf32>
    %cst_28 = arith.constant 0.000000e+00 : f32
    %97 = vector.shape_cast %18 : vector<1x256xi1> to vector<1x256xi1>
    %98 = vector.broadcast %97 : vector<1x256xi1> to vector<32x256xi1>
    %99 = vector.broadcast %cst_28 : f32 to vector<32x256xf32>
    %100 = arith.select %98, %96, %99 : vector<32x256xi1>, vector<32x256xf32>
    %101 = vector.extract_strided_slice %73 {offsets = [0, 33], sizes = [32, 256], strides = [1, 1]} : vector<32x290xf32> to vector<32x256xf32>
    %102 = vector.extract_strided_slice %73 {offsets = [0, 34], sizes = [32, 256], strides = [1, 1]} : vector<32x290xf32> to vector<32x256xf32>
    %cst_29 = arith.constant 0.000000e+00 : f32
    %103 = vector.shape_cast %20 : vector<1x256xi1> to vector<1x256xi1>
    %104 = vector.broadcast %103 : vector<1x256xi1> to vector<32x256xi1>
    %105 = vector.broadcast %cst_29 : f32 to vector<32x256xf32>
    %106 = arith.select %104, %102, %105 : vector<32x256xi1>, vector<32x256xf32>
    %107 = tpu.concatenate %78, %79, %84, %89, %90, %95, %100, %101, %106 in 0 : vector<32x256xf32>, vector<32x256xf32>, vector<32x256xf32>, vector<32x256xf32>, vector<32x256xf32>, vector<32x256xf32>, vector<32x256xf32>, vector<32x256xf32>, vector<32x256xf32> -> vector<288x256xf32>
    %108 = arith.truncf %107 : vector<288x256xf32> to vector<288x256xbf16>
    %cst_30 = arith.constant dense<0.000000e+00> : vector<2x256xf32>
    %109 = tpu.matmul %22, %108, %cst_30 {dimension_numbers = #tpu.dot_dimension_numbers<[1], [0], [0], [1], [0, 0, 1, 1], [], []>} : vector<2x288xbf16>, vector<288x256xbf16>, vector<2x256xf32> -> vector<2x256xf32>
    %110 = vector.broadcast %24 : vector<2x1xf32> to vector<2x256xf32>
    %111 = arith.addf %109, %110 : vector<2x256xf32>
    %c0_31 = arith.constant 0 : index
    %c0_32 = arith.constant 0 : index
    %c0_33 = arith.constant 0 : index
    %112 = vector.load %arg6[%c0_31, %c0_32, %c0_33] : memref<2x2x256xf32, #tpu.memory_space<vmem>>, vector<1x2x256xf32>
    %113 = vector.shape_cast %112 : vector<1x2x256xf32> to vector<2x256xf32>
    %114 = vector.shape_cast %111 : vector<2x256xf32> to vector<1x2x256xf32>
    tpu.vector_store %arg6[%c0_31, %c0_32, %c0_33], %114 {strides = array<i32>} : memref<2x2x256xf32, #tpu.memory_space<vmem>>, vector<1x2x256xf32>,
    %c1 = arith.constant 1 : index
    %c0_34 = arith.constant 0 : index
    %c0_35 = arith.constant 0 : index
    %115 = vector.load %arg1[%c1, %c0_34, %c0_35] : memref<2x6x256xf32, #tpu.memory_space<vmem>>, vector<1x6x256xf32>
    %116 = vector.shape_cast %115 : vector<1x6x256xf32> to vector<6x256xf32>
    %cst_36 = arith.constant 0.000000e+00 : f32
    %117 = vector.broadcast %cst_36 : f32 to vector<6x17xf32>
    %118 = tpu.concatenate %117, %116, %117 in 1 : vector<6x17xf32>, vector<6x256xf32>, vector<6x17xf32> -> vector<6x290xf32>
    %119 = vector.extract_strided_slice %118 {offsets = [0, 0], sizes = [6, 256], strides = [1, 1]} : vector<6x290xf32> to vector<6x256xf32>
    %cst_37 = arith.constant 0.000000e+00 : f32
    %120 = vector.shape_cast %18 : vector<1x256xi1> to vector<1x256xi1>
    %121 = vector.broadcast %120 : vector<1x256xi1> to vector<6x256xi1>
    %122 = vector.broadcast %cst_37 : f32 to vector<6x256xf32>
    %123 = arith.select %121, %119, %122 : vector<6x256xi1>, vector<6x256xf32>
    %124 = vector.extract_strided_slice %118 {offsets = [0, 1], sizes = [6, 256], strides = [1, 1]} : vector<6x290xf32> to vector<6x256xf32>
    %125 = vector.extract_strided_slice %118 {offsets = [0, 2], sizes = [6, 256], strides = [1, 1]} : vector<6x290xf32> to vector<6x256xf32>
    %cst_38 = arith.constant 0.000000e+00 : f32
    %126 = vector.shape_cast %20 : vector<1x256xi1> to vector<1x256xi1>
    %127 = vector.broadcast %126 : vector<1x256xi1> to vector<6x256xi1>
    %128 = vector.broadcast %cst_38 : f32 to vector<6x256xf32>
    %129 = arith.select %127, %125, %128 : vector<6x256xi1>, vector<6x256xf32>
    %130 = vector.extract_strided_slice %118 {offsets = [0, 16], sizes = [6, 256], strides = [1, 1]} : vector<6x290xf32> to vector<6x256xf32>
    %cst_39 = arith.constant 0.000000e+00 : f32
    %131 = vector.shape_cast %18 : vector<1x256xi1> to vector<1x256xi1>
    %132 = vector.broadcast %131 : vector<1x256xi1> to vector<6x256xi1>
    %133 = vector.broadcast %cst_39 : f32 to vector<6x256xf32>
    %134 = arith.select %132, %130, %133 : vector<6x256xi1>, vector<6x256xf32>
    %135 = vector.extract_strided_slice %118 {offsets = [0, 17], sizes = [6, 256], strides = [1, 1]} : vector<6x290xf32> to vector<6x256xf32>
    %136 = vector.extract_strided_slice %118 {offsets = [0, 18], sizes = [6, 256], strides = [1, 1]} : vector<6x290xf32> to vector<6x256xf32>
    %cst_40 = arith.constant 0.000000e+00 : f32
    %137 = vector.shape_cast %20 : vector<1x256xi1> to vector<1x256xi1>
    %138 = vector.broadcast %137 : vector<1x256xi1> to vector<6x256xi1>
    %139 = vector.broadcast %cst_40 : f32 to vector<6x256xf32>
    %140 = arith.select %138, %136, %139 : vector<6x256xi1>, vector<6x256xf32>
    %141 = vector.extract_strided_slice %118 {offsets = [0, 32], sizes = [6, 256], strides = [1, 1]} : vector<6x290xf32> to vector<6x256xf32>
    %cst_41 = arith.constant 0.000000e+00 : f32
    %142 = vector.shape_cast %18 : vector<1x256xi1> to vector<1x256xi1>
    %143 = vector.broadcast %142 : vector<1x256xi1> to vector<6x256xi1>
    %144 = vector.broadcast %cst_41 : f32 to vector<6x256xf32>
    %145 = arith.select %143, %141, %144 : vector<6x256xi1>, vector<6x256xf32>
    %146 = vector.extract_strided_slice %118 {offsets = [0, 33], sizes = [6, 256], strides = [1, 1]} : vector<6x290xf32> to vector<6x256xf32>
    %147 = vector.extract_strided_slice %118 {offsets = [0, 34], sizes = [6, 256], strides = [1, 1]} : vector<6x290xf32> to vector<6x256xf32>
    %cst_42 = arith.constant 0.000000e+00 : f32
    %148 = vector.shape_cast %20 : vector<1x256xi1> to vector<1x256xi1>
    %149 = vector.broadcast %148 : vector<1x256xi1> to vector<6x256xi1>
    %150 = vector.broadcast %cst_42 : f32 to vector<6x256xf32>
    %151 = arith.select %149, %147, %150 : vector<6x256xi1>, vector<6x256xf32>
    %152 = tpu.concatenate %123, %124, %129, %134, %135, %140, %145, %146, %151 in 0 : vector<6x256xf32>, vector<6x256xf32>, vector<6x256xf32>, vector<6x256xf32>, vector<6x256xf32>, vector<6x256xf32>, vector<6x256xf32>, vector<6x256xf32>, vector<6x256xf32> -> vector<54x256xf32>
    %153 = arith.truncf %152 : vector<54x256xf32> to vector<54x256xbf16>
    %cst_43 = arith.constant dense<0.000000e+00> : vector<32x256xf32>
    %154 = tpu.matmul %21, %153, %cst_43 {dimension_numbers = #tpu.dot_dimension_numbers<[1], [0], [0], [1], [0, 0, 1, 1], [], []>} : vector<32x54xbf16>, vector<54x256xbf16>, vector<32x256xf32> -> vector<32x256xf32>
    %155 = vector.broadcast %23 : vector<32x1xf32> to vector<32x256xf32>
    %156 = arith.addf %154, %155 : vector<32x256xf32>
    %cst_44 = arith.constant 0.000000e+00 : f32
    %157 = vector.broadcast %cst_44 : f32 to vector<32x256xf32>
    %158 = arith.cmpf oge, %156, %157 : vector<32x256xf32>
    %cst_45 = arith.constant 1.000000e-01 : f32
    %159 = vector.broadcast %cst_45 : f32 to vector<32x256xf32>
    %160 = arith.mulf %159, %156 : vector<32x256xf32>
    %161 = arith.select %158, %156, %160 : vector<32x256xi1>, vector<32x256xf32>
    %cst_46 = arith.constant 0.000000e+00 : f32
    %162 = vector.broadcast %cst_46 : f32 to vector<32x17xf32>
    %163 = tpu.concatenate %162, %161, %162 in 1 : vector<32x17xf32>, vector<32x256xf32>, vector<32x17xf32> -> vector<32x290xf32>
    %164 = vector.extract_strided_slice %163 {offsets = [0, 0], sizes = [32, 256], strides = [1, 1]} : vector<32x290xf32> to vector<32x256xf32>
    %cst_47 = arith.constant 0.000000e+00 : f32
    %165 = vector.shape_cast %18 : vector<1x256xi1> to vector<1x256xi1>
    %166 = vector.broadcast %165 : vector<1x256xi1> to vector<32x256xi1>
    %167 = vector.broadcast %cst_47 : f32 to vector<32x256xf32>
    %168 = arith.select %166, %164, %167 : vector<32x256xi1>, vector<32x256xf32>
    %169 = vector.extract_strided_slice %163 {offsets = [0, 1], sizes = [32, 256], strides = [1, 1]} : vector<32x290xf32> to vector<32x256xf32>
    %170 = vector.extract_strided_slice %163 {offsets = [0, 2], sizes = [32, 256], strides = [1, 1]} : vector<32x290xf32> to vector<32x256xf32>
    %cst_48 = arith.constant 0.000000e+00 : f32
    %171 = vector.shape_cast %20 : vector<1x256xi1> to vector<1x256xi1>
    %172 = vector.broadcast %171 : vector<1x256xi1> to vector<32x256xi1>
    %173 = vector.broadcast %cst_48 : f32 to vector<32x256xf32>
    %174 = arith.select %172, %170, %173 : vector<32x256xi1>, vector<32x256xf32>
    %175 = vector.extract_strided_slice %163 {offsets = [0, 16], sizes = [32, 256], strides = [1, 1]} : vector<32x290xf32> to vector<32x256xf32>
    %cst_49 = arith.constant 0.000000e+00 : f32
    %176 = vector.shape_cast %18 : vector<1x256xi1> to vector<1x256xi1>
    %177 = vector.broadcast %176 : vector<1x256xi1> to vector<32x256xi1>
    %178 = vector.broadcast %cst_49 : f32 to vector<32x256xf32>
    %179 = arith.select %177, %175, %178 : vector<32x256xi1>, vector<32x256xf32>
    %180 = vector.extract_strided_slice %163 {offsets = [0, 17], sizes = [32, 256], strides = [1, 1]} : vector<32x290xf32> to vector<32x256xf32>
    %181 = vector.extract_strided_slice %163 {offsets = [0, 18], sizes = [32, 256], strides = [1, 1]} : vector<32x290xf32> to vector<32x256xf32>
    %cst_50 = arith.constant 0.000000e+00 : f32
    %182 = vector.shape_cast %20 : vector<1x256xi1> to vector<1x256xi1>
    %183 = vector.broadcast %182 : vector<1x256xi1> to vector<32x256xi1>
    %184 = vector.broadcast %cst_50 : f32 to vector<32x256xf32>
    %185 = arith.select %183, %181, %184 : vector<32x256xi1>, vector<32x256xf32>
    %186 = vector.extract_strided_slice %163 {offsets = [0, 32], sizes = [32, 256], strides = [1, 1]} : vector<32x290xf32> to vector<32x256xf32>
    %cst_51 = arith.constant 0.000000e+00 : f32
    %187 = vector.shape_cast %18 : vector<1x256xi1> to vector<1x256xi1>
    %188 = vector.broadcast %187 : vector<1x256xi1> to vector<32x256xi1>
    %189 = vector.broadcast %cst_51 : f32 to vector<32x256xf32>
    %190 = arith.select %188, %186, %189 : vector<32x256xi1>, vector<32x256xf32>
    %191 = vector.extract_strided_slice %163 {offsets = [0, 33], sizes = [32, 256], strides = [1, 1]} : vector<32x290xf32> to vector<32x256xf32>
    %192 = vector.extract_strided_slice %163 {offsets = [0, 34], sizes = [32, 256], strides = [1, 1]} : vector<32x290xf32> to vector<32x256xf32>
    %cst_52 = arith.constant 0.000000e+00 : f32
    %193 = vector.shape_cast %20 : vector<1x256xi1> to vector<1x256xi1>
    %194 = vector.broadcast %193 : vector<1x256xi1> to vector<32x256xi1>
    %195 = vector.broadcast %cst_52 : f32 to vector<32x256xf32>
    %196 = arith.select %194, %192, %195 : vector<32x256xi1>, vector<32x256xf32>
    %197 = tpu.concatenate %168, %169, %174, %179, %180, %185, %190, %191, %196 in 0 : vector<32x256xf32>, vector<32x256xf32>, vector<32x256xf32>, vector<32x256xf32>, vector<32x256xf32>, vector<32x256xf32>, vector<32x256xf32>, vector<32x256xf32>, vector<32x256xf32> -> vector<288x256xf32>
    %198 = arith.truncf %197 : vector<288x256xf32> to vector<288x256xbf16>
    %cst_53 = arith.constant dense<0.000000e+00> : vector<2x256xf32>
    %199 = tpu.matmul %22, %198, %cst_53 {dimension_numbers = #tpu.dot_dimension_numbers<[1], [0], [0], [1], [0, 0, 1, 1], [], []>} : vector<2x288xbf16>, vector<288x256xbf16>, vector<2x256xf32> -> vector<2x256xf32>
    %200 = vector.broadcast %24 : vector<2x1xf32> to vector<2x256xf32>
    %201 = arith.addf %199, %200 : vector<2x256xf32>
    %c1_54 = arith.constant 1 : index
    %c0_55 = arith.constant 0 : index
    %c0_56 = arith.constant 0 : index
    %202 = vector.load %arg6[%c1_54, %c0_55, %c0_56] : memref<2x2x256xf32, #tpu.memory_space<vmem>>, vector<1x2x256xf32>
    %203 = vector.shape_cast %202 : vector<1x2x256xf32> to vector<2x256xf32>
    %204 = vector.shape_cast %201 : vector<2x256xf32> to vector<1x2x256xf32>
    tpu.vector_store %arg6[%c1_54, %c0_55, %c0_56], %204 {strides = array<i32>} : memref<2x2x256xf32, #tpu.memory_space<vmem>>, vector<1x2x256xf32>,
    return
  }
  func.func @transform_0(%arg0: i32) -> (i32, i32, i32) {
    %c0_i32 = arith.constant 0 : i32
    %c0_i32_0 = arith.constant 0 : i32
    %c0_i32_1 = arith.constant 0 : i32
    %c0_i32_2 = arith.constant 0 : i32
    return %c0_i32, %c0_i32_0, %c0_i32_1 : i32, i32, i32
  }
  func.func @transform_1(%arg0: i32) -> (i32, i32) {
    %c0_i32 = arith.constant 0 : i32
    %c0_i32_0 = arith.constant 0 : i32
    %c0_i32_1 = arith.constant 0 : i32
    return %c0_i32, %c0_i32_0 : i32, i32
  }
  func.func @transform_2(%arg0: i32) -> (i32, i32) {
    %c0_i32 = arith.constant 0 : i32
    %c0_i32_0 = arith.constant 0 : i32
    %c0_i32_1 = arith.constant 0 : i32
    return %c0_i32, %c0_i32_0 : i32, i32
  }
  func.func @transform_3(%arg0: i32) -> (i32, i32) {
    %c0_i32 = arith.constant 0 : i32
    %c0_i32_0 = arith.constant 0 : i32
    %c0_i32_1 = arith.constant 0 : i32
    return %c0_i32, %c0_i32_0 : i32, i32
  }
  func.func @transform_4(%arg0: i32) -> (i32, i32) {
    %c0_i32 = arith.constant 0 : i32
    %c0_i32_0 = arith.constant 0 : i32
    %c0_i32_1 = arith.constant 0 : i32
    return %c0_i32, %c0_i32_0 : i32, i32
  }
  func.func @transform_5(%arg0: i32) -> (i32, i32, i32) {
    %c0_i32 = arith.constant 0 : i32
    %c0_i32_0 = arith.constant 0 : i32
    %c0_i32_1 = arith.constant 0 : i32
    %c0_i32_2 = arith.constant 0 : i32
    return %c0_i32, %c0_i32_0, %c0_i32_1 : i32, i32, i32
  }
}

</mosaic_0001>

<bundles_post_ra>
// kernel: fused_flow_forward.1
= control target key start
LH: loop header
LB: loop body
LE: loop exit
PB: predicated region body
PF: predicated region fallthrough
CT: control target
= control target key end

     0   :  { %s2483_s22 = smov 17   ;;  %vm3976_vm0 = vcmask 138240   ;;  %s2484_s23 = smov 112   ;;  %v21_v20 = vlaneseq  ;;  %v2492_v21 = vmov 0   ;;  %vm3977_vm1 = vcmask 900096   ;;  %s3941_s0 = inlined_call_operand.vmem [shape: f32[2,6,256], index: 0, kind: input, shape index: {}]   ;;  %s3942_s2 = inlined_call_operand.vmem [shape: f32[32,1], index: 2, kind: input, shape index: {}]   ;;  %s3943_s1 = inlined_call_operand.vmem [shape: bf16[32,54], index: 1, kind: input, shape index: {}]   ;;  %s3944_s4 = inlined_call_operand.vmem [shape: f32[2,1], index: 4, kind: input, shape index: {}]   ;;  %s3945_s3 = inlined_call_operand.vmem [shape: bf16[2,288], index: 3, kind: input, shape index: {}]   ;;  %s3946_s5 = inlined_call_operand.vmem [shape: f32[2,2,256], index: 5, kind: output, shape index: {}]  }
   0x1   :  { %v62_v0 = vld [vmem:[%s3941_s0] sm:$0x3f]  ;;  %v63_v1 = vld [vmem:[%s3941_s0 + $0x8] sm:$0x3f]  ;;  %s2485_s24 = smov 126   ;;  %s2486_s25 = smov 110   ;;  %1913 = vset.pattern.permute.xlu2 %v2492_v21  ;;  %1914 = vset.pattern.permute.xlu0 %v2492_v21 }
   0x2   :  { %v1868_v2 = vpack.i.bf16 %v63_v1, %v62_v0  ;;  %s2487_s26 = smov 96   ;;  %s2488_s27 = smov 94   ;;  %1915 = vset.pattern.permute.xlu1 %v2492_v21  ;;  %v57_v23 = vld [vmem:[%s3942_s2] sm:$0xff]  ;;  %v22_v25 = vand.u32 127, %v21_v20  ;;  %v60_v29 = vld [vmem:[%s3942_s2 + $0x18] sm:$0xff]  ;;  %vm3978_vm4 = vcmask 785408  }
   0x3   :  { %s2489_s28 = smov 95   ;;  %s2490_s29 = smov 111   ;;  %v1775_v41 = vld [vmem:[%s3941_s0 + $0x10] sm:$0x3f]  ;;  %v1776_v42 = vld [vmem:[%s3941_s0 + $0x18] sm:$0x3f] }
   0x4   :  { %1869 = vrot.lane.b32.xlu0 %v1868_v2, %s2483_s22  ;;  %s2491_s30 = smov 127   ;;  %v23_v27 = vadd.s32 128, %v22_v25  ;;  %v28_v34 = vand.u32 15, %v22_v25  ;;  %vm95_vm6 = vcmask 1031168   ;;  %v1916_v45 = vpack.i.bf16 %v1776_v42, %v1775_v41 }
   0x5   :  { %vm108_vm7 = vcmask 916480   ;;  %vm3974_vm8 = vcmask 769024   ;;  %vm212_vm9 = vcmask 777216   ;;  %vm3947_vm11 = vcmask 1042432  }
   0x6   :  { %v35_v33 = vand.u32 15, %v23_v27  ;;  %vm2576_vm3 = vcmp.le.s32.totalorder %v28_v34, 14  ;;  %vm2580_vm5 = vcmp.ge.s32.totalorder %v28_v34, 1  ;;  %vm3952_vm12 = vcmask 1043456   ;;  %v58_v34 = vld [vmem:[%s3942_s2 + $0x8] sm:$0xff] }
   0x7   :  { %vm223_vm13 = vcmask 1041408   ;;  %vm3948_vm14 = vcmask 908288   ;;  %vm3950_vm15 = vcmask 1045504  }
   0x8   :  { %vm2572_vm2 = vcmp.ge.s32.totalorder %v35_v33, 1  ;;  %vm2596_vm10 = vcmp.le.s32.totalorder %v35_v33, 14 }
  0x76   :  { %v1870_v3 = vpop.permute.xlu0 %1869 }
  0x77   :  { %v1872_v4 = vunpack.i.h.bf16 %v1870_v3  ;;  %v1871_v5 = vunpack.i.l.bf16 %v1870_v3 }
  0x79   :  { %v76_v6 = vsel %vm3976_vm0, %v1872_v4, 0.0  ;;  %v2532_v7 = vsel %vm3976_vm0, %v1871_v5, %v1872_v4  ;;  %v2535_v8 = vsel %vm3976_vm0, 0.0, %v1871_v5 }
  0x7a   :  { %106 = vrot.lane.b32.xlu2 %v76_v6, %s2484_s23  ;;  %93 = vrot.lane.b32.xlu1 %v76_v6, %s2485_s24  ;;  %v1873_v9 = vpack.i.bf16 %v2532_v7, %v2535_v8  ;;  %v203_v10 = vrot.slane %v2535_v8, 6  ;;  %v204_v11 = vrot.slane %v2532_v7, 6  ;;  %v205_v13 = vrot.slane %v76_v6, 6 }
  0x7b   :  { %v154_v14 = vrot.slane %v2535_v8, 2  ;;  %v155_v15 = vrot.slane %v2532_v7, 2  ;;  %v156_v17 = vrot.slane %v76_v6, 2 }
  0x7c   :  { %1874 = vrot.lane.b32.xlu0 %v1873_v9, %s2485_s24  ;;  %v1903_v12 = vpack.i.bf16 %v204_v11, %v203_v10 }
  0x7d   :  { %v1908_v16 = vpack.i.bf16 %v155_v15, %v154_v14 }
  0x82   :  { %1884 = vrot.lane.b32.xlu2 %v1873_v9, %s2486_s25  ;;  %1879 = vrot.lane.b32.xlu1 %v1873_v9, %s2484_s23 }
  0x84   :  { %119 = vrot.lane.b32.xlu0 %v76_v6, %s2486_s25 }
  0x8a   :  { %132 = vrot.lane.b32.xlu2 %v76_v6, %s2487_s26  ;;  %1889 = vrot.lane.b32.xlu1 %v1873_v9, %s2487_s26 }
  0x8c   :  { %1894 = vrot.lane.b32.xlu0 %v1873_v9, %s2488_s27 }
  0x92   :  { %145 = vrot.lane.b32.xlu1 %v76_v6, %s2488_s27  ;;  %1904 = vrot.lane.b32.xlu2 %v1903_v12, %s2489_s28 }
  0x94   :  { %210 = vrot.lane.b32.xlu0 %v205_v13, %s2489_s28 }
  0x9a   :  { %1899 = vrot.lane.b32.xlu1 %v1873_v9, %s2490_s29  ;;  %184 = vrot.lane.b32.xlu2 %v76_v6, %s2490_s29 }
  0x9c   :  { %1909 = vrot.lane.b32.xlu0 %v1908_v16, %s2491_s30 }
  0xa2   :  { %161 = vrot.lane.b32.xlu1 %v156_v17, %s2491_s30  ;;  %242 = vperm.xlu2 %1913, %v57_v23  }
  0xa4   :  { %247 = vperm.xlu0 %1914, %v58_v34  }
  0xaa   :  { %257 = vperm.xlu2 %1913, %v60_v29  }
  0xb2   :  { %1917 = vrot.lane.b32.xlu2 %v1916_v45, %s2483_s22 }
  0xd4   :  { %v2559_v18 = vpop.permute.xlu2 %106 }
  0xdc   :  { %v1885_v19 = vpop.permute.xlu2 %1884 }
  0xdd   :  { %v1887_v31 = vunpack.i.h.bf16 %v1885_v19  ;;  %v1886_v32 = vunpack.i.l.bf16 %v1885_v19 }
  0xdf   :  { %v122_v35 = vsel %vm3977_vm1, %v1886_v32, %v1887_v31 }
  0xe0   :  { %v126_v47 = vsel %vm2576_vm3, %v122_v35, 0.0  ;;  %v59_v35 = vld [vmem:[%s3942_s2 + $0x10] sm:$0xff] }
  0xe1   :  { %v193_v0 = vrot.slane %v126_v47, 2  ;;  %252 = vperm.xlu1 %1915, %v59_v35  }
  0xe4   :  { %v133_v26 = vpop.permute.xlu2 %132 }
  0xec   :  { %v2561_v22 = vpop.permute.xlu1 %93  ;;  %v1905_v38 = vpop.permute.xlu2 %1904 }
  0xed   :  { %v1907_v48 = vunpack.i.h.bf16 %v1905_v38  ;;  %v1906_v52 = vunpack.i.l.bf16 %v1905_v38 }
  0xee   :  { %v2566_v24 = vpop.permute.xlu0 %1874 }
  0xef   :  { %v1877_v61 = vunpack.i.h.bf16 %v2566_v24  ;;  %v1876_v1 = vunpack.i.l.bf16 %v2566_v24  ;;  %v213_v4 = vsel %vm212_vm9, %v1906_v52, %v1907_v48 }
  0xf1   :  { %v97_v20 = vsel %vm95_vm6, %v1877_v61, %v2561_v22  ;;  %v96_v21 = vsel %vm95_vm6, %v1876_v1, %v1877_v61  ;;  %v1856_v1 = vld [vmem:[%s3943_s1] sm:$0xff] }
  0xf2   :  { %v100_v22 = vsel %vm2576_vm3, %v96_v21, 0.0  ;;  %v101_v29 = vsel %vm2596_vm10, %v97_v20, 0.0 }
  0xf4   :  { %v1880_v28 = vpop.permute.xlu1 %1879  ;;  %v185_v41 = vpop.permute.xlu2 %184 }
  0xf5   :  { %v1882_v53 = vunpack.i.h.bf16 %v1880_v28  ;;  %v1881_v54 = vunpack.i.l.bf16 %v1880_v28 }
  0xf6   :  { %v120_v30 = vpop.permute.xlu0 %119 }
  0xf7   :  { %v123_v62 = vsel %vm3977_vm1, %v1887_v31, %v120_v30  ;;  %v109_v2 = vsel %vm108_vm7, %v1881_v54, %v1882_v53  ;;  %v110_v12 = vsel %vm108_vm7, %v1882_v53, %v2559_v18 }
  0xf8   :  { %v127_v13 = vsel %vm2596_vm10, %v123_v62, 0.0  ;;  %v113_v18 = vsel %vm2580_vm5, %v109_v2, 0.0  ;;  %v114_v27 = vsel %vm2572_vm2, %v110_v12, 0.0 }
  0xf9   :  { %v194_v24 = vrot.slane %v127_v13, 2  ;;  %v176_v32 = vrot.slane %v113_v18, 6  ;;  %v177_v33 = vrot.slane %v114_v27, 6 }
  0xfc   :  { %v1890_v39 = vpop.permute.xlu1 %1889 }
  0xfd   :  { %v1892_v43 = vunpack.i.h.bf16 %v1890_v39  ;;  %v1891_v44 = vunpack.i.l.bf16 %v1890_v39 }
  0xfe   :  { %v1895_v46 = vpop.permute.xlu0 %1894 }
  0xff   :  { %v135_v49 = vsel %vm3978_vm4, %v1891_v44, %v1892_v43  ;;  %v1897_v50 = vunpack.i.h.bf16 %v1895_v46  ;;  %v1896_v51 = vunpack.i.l.bf16 %v1895_v46  ;;  %v136_v57 = vsel %vm3978_vm4, %v1892_v43, %v133_v26 }
 0x100   :  { %v139_v55 = vsel %vm2580_vm5, %v135_v49, 0.0  ;;  %v140_v5 = vsel %vm2572_vm2, %v136_v57, 0.0  ;;  %v170_v43 = vrot.slane %v100_v22, 4  ;;  %v171_v44 = vrot.slane %v101_v29, 4 }
 0x101   :  { %v148_v58 = vsel %vm3974_vm8, %v1896_v51, %v1897_v50  ;;  %v199_v59 = vrot.slane %v139_v55, 4  ;;  %v200_v19 = vrot.slane %v140_v5, 4  ;;  %v81_v55 = vsel %vm2580_vm5, %v2535_v8, 0.0 }
 0x102   :  { %v152_v60 = vsel %vm2576_vm3, %v148_v58, 0.0  ;;  %v224_v49 = vsel %vm223_vm13, %v170_v43, %v176_v32  ;;  %v225_v51 = vsel %vm223_vm13, %v171_v44, %v177_v33 }
 0x103   :  { %v238_v63 = vpack.c.bf16 %v152_v60, %v152_v60  ;;  %v228_v10 = vsel %vm3952_vm12, %v193_v0, %v199_v59  ;;  %v230_v11 = vsel %vm223_vm13, %v199_v59, %v213_v4  ;;  %v229_v28 = vsel %vm3952_vm12, %v194_v24, %v200_v19 }
 0x104   :  { %v146_v3 = vpop.permute.xlu1 %145  ;;  %v236_v23 = vpack.c.bf16 %v230_v11, %v228_v10 }
 0x105   :  { %v149_v6 = vsel %vm3974_vm8, %v1897_v50, %v146_v3  ;;  %v279_v9 = vsel %vm3947_vm11, %v238_v63, 0  ;;  %v82_v63 = vsel %vm2572_vm2, %v2532_v7, 0.0  ;;  %v1857_v7 = vld [vmem:[%s3943_s1 + $0x8] sm:$0xff]  ;;  %v2670_v3 = vpop.permute.xlu2 %242 }
 0x106   :  { %v211_v14 = vpop.permute.xlu0 %210  ;;  %288 = vmatpush.bf16.msra.mxu0 %v279_v9  ;;  %v153_v15 = vsel %vm2596_vm10, %v149_v6, 0.0  ;;  %4003 = vst [vmem:[#allocation2_spill] sm:$0xff] %v2670_v3 }
 0x107   :  { %v214_v16 = vsel %vm212_vm9, %v1907_v48, %v211_v14  ;;  %v239_v17 = vpack.c.bf16 %v153_v15, %v153_v15 }
 0x108   :  { %v231_v26 = vsel %vm223_vm13, %v200_v19, %v214_v16 }
 0x109   :  { %v282_v25 = vsel %vm3947_vm11, %v239_v17, 0  ;;  %v237_v31 = vpack.c.bf16 %v231_v26, %v229_v28  ;;  %vm3951_vm11 = vcmask 1039360  }
 0x10a   :  { %289 = vmatpush.bf16.msra.mxu0 %v236_v23  ;;  %307 = vmatpush.bf16.msra.mxu1 %v282_v25 }
 0x10c   :  { %v1900_v30 = vpop.permute.xlu1 %1899 }
 0x10d   :  { %v1902_v38 = vunpack.i.h.bf16 %v1900_v30  ;;  %v1901_v39 = vunpack.i.l.bf16 %v1900_v30  ;;  %v2672_v4 = vpop.permute.xlu2 %257 }
 0x10e   :  { %308 = vmatpush.bf16.msra.mxu1 %v237_v31  ;;  %v1910_v42 = vpop.permute.xlu0 %1909  ;;  %4004 = vst [vmem:[#allocation3_spill] sm:$0xff] %v2672_v4 }
 0x10f   :  { %v1912_v45 = vunpack.i.h.bf16 %v1910_v42  ;;  %v1911_v46 = vunpack.i.l.bf16 %v1910_v42  ;;  %v187_v47 = vsel %vm3948_vm14, %v1901_v39, %v1902_v38  ;;  %v188_v48 = vsel %vm3948_vm14, %v1902_v38, %v185_v41 }
 0x110   :  { %v226_v50 = vsel %vm3950_vm15, %v187_v47, %v193_v0  ;;  %v227_v52 = vsel %vm3950_vm15, %v188_v48, %v194_v24  ;;  %vm3949_vm14 = vcmask 441344  }
 0x111   :  { %v234_v53 = vpack.c.bf16 %v226_v50, %v224_v49  ;;  %v235_v54 = vpack.c.bf16 %v227_v52, %v225_v51  ;;  %v164_v57 = vsel %vm3951_vm11, %v1911_v46, %v1912_v45 }
 0x112   :  { %v218_v58 = vsel %vm3950_vm15, %v81_v55, %v164_v57  ;;  %v221_v59 = vsel %vm3952_vm12, %v164_v57, %v170_v43 }
 0x113   :  { %290 = vmatpush.bf16.msra.mxu0 %v234_v53  ;;  %309 = vmatpush.bf16.msra.mxu1 %v235_v54  ;;  %v232_v62 = vpack.c.bf16 %v221_v59, %v218_v58 }
 0x114   :  { %v162_v60 = vpop.permute.xlu1 %161 }
 0x115   :  { %v165_v61 = vsel %vm3951_vm11, %v1912_v45, %v162_v60  ;;  %v1918_v5 = vpop.permute.xlu2 %1917 }
 0x116   :  { %v219_v0 = vsel %vm3950_vm15, %v82_v63, %v165_v61  ;;  %v222_v8 = vsel %vm3952_vm12, %v165_v61, %v171_v44  ;;  %v1920_v6 = vunpack.i.h.bf16 %v1918_v5  ;;  %v1919_v9 = vunpack.i.l.bf16 %v1918_v5  ;;  %v2703_v24 = vpop.permute.xlu0 %247 }
 0x117   :  { %291 = vmatpush.bf16.msra.mxu0 %v232_v62  ;;  %v233_v2 = vpack.c.bf16 %v222_v8, %v219_v0  ;;  %4005 = vst [vmem:[#allocation4_spill] sm:$0xff] %v2703_v24 }
 0x118   :  { %v2675_v10 = vsel %vm3976_vm0, %v1920_v6, 0.0  ;;  %v2678_v11 = vsel %vm3976_vm0, %v1919_v9, %v1920_v6  ;;  %v2681_v12 = vsel %vm3976_vm0, 0.0, %v1919_v9 }
 0x119   :  { %310 = vmatpush.bf16.msra.mxu1 %v233_v2  ;;  %v2685_v13 = vpack.i.bf16 %v2678_v11, %v2681_v12  ;;  %976 = vrot.lane.b32.xlu0 %v2675_v10, %s2488_s27  ;;  %v1031_v14 = vrot.slane %v2681_v12, 6  ;;  %v1032_v15 = vrot.slane %v2678_v11, 6  ;;  %v920_v37 = vsel %vm2580_vm5, %v2681_v12, 0.0 }
 0x11a   :  { %1697 = vmatmul.msk.bf16.vlgmr.msra.gmra.mxu0 %vm3949_vm14, %v1856_v1 }
 0x11b   :  { %1927 = vrot.lane.b32.xlu1 %v2685_v13, %s2486_s25  ;;  %1922 = vrot.lane.b32.xlu2 %v2685_v13, %s2488_s27  ;;  %v2699_v16 = vpack.i.bf16 %v1032_v15, %v1031_v14 }
 0x11c   :  { %1699 = vmatmul.msk.bf16.vlgmr.msra.gmra.mxu1 %vm3949_vm14, %v1856_v1 }
 0x121   :  { %1932 = vrot.lane.b32.xlu0 %v2685_v13, %s2487_s26 }
 0x123   :  { %952 = vrot.lane.b32.xlu2 %v2675_v10, %s2486_s25 }
 0x12a   :  { %1698 = vmatmul.msk.bf16.gmra.mxu0 %vm3949_vm14, %v1857_v7 }
 0x12c   :  { %1700 = vmatmul.msk.bf16.gmra.mxu1 %vm3949_vm14, %v1857_v7 }
 0x153   :  { %v2708_v33 = vpop.permute.xlu1 %252 }
 0x154   :  { %4006 = vst [vmem:[#allocation5_spill] sm:$0xff] %v2708_v33 }
 0x175   :  { %v2717_v59 = vpop.permute.xlu2 %1922 }
 0x176   :  { %v3954_v60 = vunpack.i.h.bf16 %v2717_v59 }
 0x17d   :  { %v2725_v63 = vpop.permute.xlu2 %952 }
 0x18b   :  { %v977_v61 = vpop.permute.xlu0 %976 }
 0x18c   :  { %v2723_v62 = vsel %vm3974_vm8, %v3954_v60, %v977_v61 }
 0x18d   :  { %v2740_v14 = vpop.permute.xlu1 %1927 }
 0x18e   :  { %v1929_v60 = vunpack.i.l.bf16 %v2740_v14 }
 0x197   :  { %v293_v17 = vpop.f32.mrf.mxu0 }
 0x198   :  { %v294_v19 = vadd.f32 %v293_v17, %v2670_v3 }
 0x199   :  { %v312_v20 = vpop.f32.mrf.mxu1 }
 0x19a   :  { %v330_v21 = vmul.f32 0.1, %v294_v19  ;;  %v313_v23 = vadd.f32 %v312_v20, %v2670_v3  ;;  %vm322_vm14 = vcmp.ge.f32.partialorder %v294_v19, 0.0 }
 0x19c   :  { %vm323_vm15 = vcmp.ge.f32.partialorder %v313_v23, 0.0  ;;  %v331_v18 = vmul.f32 0.1, %v313_v23  ;;  %v338_v25 = vsel %vm322_vm14, %v294_v19, %v330_v21 }
 0x19e   :  { %v339_v26 = vsel %vm323_vm15, %v313_v23, %v331_v18 }
 0x19f   :  { %v295_v27 = vpop.f32.mrf.mxu0  ;;  %v1936_v28 = vpack.i.bf16 %v339_v26, %v338_v25 }
 0x1a0   :  { %v296_v22 = vadd.f32 %v295_v27, %v2703_v24  ;;  %v2759_v27 = vpop.permute.xlu0 %1932 }
 0x1a1   :  { %v314_v29 = vpop.f32.mrf.mxu1  ;;  %1937 = vrot.lane.b32.xlu1 %v1936_v28, %s2483_s22 }
 0x1a2   :  { %v332_v30 = vmul.f32 0.1, %v296_v22  ;;  %v315_v31 = vadd.f32 %v314_v29, %v2703_v24  ;;  %vm324_vm11 = vcmp.ge.f32.partialorder %v296_v22, 0.0  ;;  %v4018_v24 = vunpack.i.h.bf16 %v2717_v59 }
 0x1a4   :  { %vm325_vm12 = vcmp.ge.f32.partialorder %v315_v31, 0.0  ;;  %v333_v32 = vmul.f32 0.1, %v315_v31  ;;  %v340_v34 = vsel %vm324_vm11, %v296_v22, %v332_v30 }
 0x1a6   :  { %v341_v35 = vsel %vm325_vm12, %v315_v31, %v333_v32 }
 0x1a7   :  { %v298_v38 = vpop.f32.mrf.mxu0  ;;  %v1941_v39 = vpack.i.bf16 %v341_v35, %v340_v34 }
 0x1a8   :  { %v299_v41 = vadd.f32 %v298_v38, %v2708_v33 }
 0x1a9   :  { %v317_v42 = vpop.f32.mrf.mxu1  ;;  %1942 = vrot.lane.b32.xlu2 %v1941_v39, %s2483_s22 }
 0x1aa   :  { %v318_v43 = vadd.f32 %v317_v42, %v2708_v33  ;;  %vm326_vm14 = vcmp.ge.f32.partialorder %v299_v41, 0.0  ;;  %v334_v44 = vmul.f32 0.1, %v299_v41  ;;  %v1934_v33 = vunpack.i.l.bf16 %v2759_v27 }
 0x1ac   :  { %vm327_vm15 = vcmp.ge.f32.partialorder %v318_v43, 0.0  ;;  %v335_v45 = vmul.f32 0.1, %v318_v43  ;;  %v342_v46 = vsel %vm326_vm14, %v299_v41, %v334_v44  ;;  %vm3029_vm14 = vmpackc.low %vm2576_vm3, %vm2576_vm3 }
 0x1ae   :  { %v343_v47 = vsel %vm327_vm15, %v318_v43, %v335_v45  ;;  %v984_v45 = vrot.slane %v2681_v12, 2  ;;  %vm3070_vm15 = vmpackc.low %vm2572_vm2, %vm2572_vm2 }
 0x1af   :  { %v300_v48 = vpop.f32.mrf.mxu0  ;;  %v1946_v49 = vpack.i.bf16 %v343_v47, %v342_v46 }
 0x1b0   :  { %v301_v50 = vadd.f32 %v300_v48, %v2672_v4 }
 0x1b1   :  { %v319_v51 = vpop.f32.mrf.mxu1  ;;  %1947 = vrot.lane.b32.xlu0 %v1946_v49, %s2483_s22 }
 0x1b2   :  { %v336_v52 = vmul.f32 0.1, %v301_v50  ;;  %v320_v53 = vadd.f32 %v319_v51, %v2672_v4  ;;  %vm328_vm11 = vcmp.ge.f32.partialorder %v301_v50, 0.0 }
 0x1b4   :  { %vm329_vm12 = vcmp.ge.f32.partialorder %v320_v53, 0.0  ;;  %v337_v54 = vmul.f32 0.1, %v320_v53  ;;  %v344_v55 = vsel %vm328_vm11, %v301_v50, %v336_v52  ;;  %vm4027_vm11 = vcmask 1042432  }
 0x1b6   :  { %v345_v57 = vsel %vm329_vm12, %v320_v53, %v337_v54  ;;  %vm818_vm12 = vcmask 261120  }
 0x1b7   :  { %v1951_v58 = vpack.i.bf16 %v345_v57, %v344_v55 }
 0x1b9   :  { %1952 = vrot.lane.b32.xlu1 %v1951_v58, %s2483_s22 }
 0x203   :  { %v1943_v0 = vpop.permute.xlu2 %1942 }
 0x204   :  { %v1945_v8 = vunpack.i.h.bf16 %v1943_v0  ;;  %v1944_v1 = vunpack.i.l.bf16 %v1943_v0  ;;  %v1033_v0 = vrot.slane %v2675_v10, 6 }
 0x206   :  { %v391_v2 = vsel %vm3976_vm0, %v1945_v8, 0.0  ;;  %v2729_v7 = vsel %vm3976_vm0, %v1944_v1, %v1945_v8  ;;  %v2732_v5 = vsel %vm3976_vm0, 0.0, %v1944_v1 }
 0x207   :  { %v1986_v6 = vpack.i.bf16 %v391_v2, %v2729_v7  ;;  %v2737_v9 = vpack.i.bf16 %v2729_v7, %v2732_v5  ;;  %v2036_v47 = vpack.i.bf16 %v984_v45, %v391_v2 }
 0x209   :  { %1987 = vrot.lane.b32.xlu1 %v1986_v6, %s2485_s24 }
 0x211   :  { %1997 = vrot.lane.b32.xlu1 %v1986_v6, %s2484_s23 }
 0x213   :  { %v1938_v15 = vpop.permute.xlu1 %1937 }
 0x214   :  { %v1940_v17 = vunpack.i.h.bf16 %v1938_v15  ;;  %v1939_v19 = vunpack.i.l.bf16 %v1938_v15 }
 0x216   :  { %v390_v20 = vsel %vm3976_vm0, %v1940_v17, 0.0  ;;  %v2745_v21 = vsel %vm3976_vm0, %v1939_v19, %v1940_v17  ;;  %v2748_v23 = vsel %vm3976_vm0, 0.0, %v1939_v19 }
 0x217   :  { %4007 = vst [vmem:[#allocation6_spill] sm:$0xff] %v2748_v23  ;;  %v1981_v18 = vpack.i.bf16 %v2732_v5, %v390_v20  ;;  %v1956_v25 = vpack.i.bf16 %v2745_v21, %v2748_v23  ;;  %v2757_v26 = vpack.i.bf16 %v390_v20, %v2745_v21  ;;  %v2031_v51 = vpack.i.bf16 %v2729_v7, %v390_v20 }
 0x218   :  { %v2136_v8 = vpack.i.bf16 %v2748_v23, %v1033_v0  ;;  %v2156_v20 = vpack.i.bf16 %v2748_v23, %v2675_v10 }
 0x219   :  { %2007 = vrot.lane.b32.xlu1 %v1986_v6, %s2486_s25  ;;  %1982 = vrot.lane.b32.xlu0 %v1981_v18, %s2485_s24 }
 0x21a   :  { %1957 = vrot.lane.b32.xlu2 %v1956_v25, %s2485_s24 }
 0x221   :  { %2017 = vrot.lane.b32.xlu1 %v1986_v6, %s2487_s26  ;;  %1992 = vrot.lane.b32.xlu0 %v1981_v18, %s2484_s23 }
 0x222   :  { %1962 = vrot.lane.b32.xlu2 %v1956_v25, %s2484_s23 }
 0x223   :  { %v1948_v29 = vpop.permute.xlu0 %1947 }
 0x224   :  { %v1950_v30 = vunpack.i.h.bf16 %v1948_v29  ;;  %v1949_v31 = vunpack.i.l.bf16 %v1948_v29 }
 0x226   :  { %v2769_v32 = vsel %vm3976_vm0, 0.0, %v1949_v31  ;;  %v392_v34 = vsel %vm3976_vm0, %v1950_v30, 0.0  ;;  %v2773_v35 = vsel %vm3976_vm0, %v1949_v31, %v1950_v30 }
 0x227   :  { %v2166_v38 = vpack.i.bf16 %v2769_v32, %v2732_v5  ;;  %v2778_v39 = vpack.i.bf16 %v2769_v32, %v391_v2  ;;  %v2783_v41 = vpack.i.bf16 %v392_v34, %v2773_v35  ;;  %v2041_v52 = vpack.i.bf16 %v2773_v35, %v2769_v32 }
 0x228   :  { %v2066_v53 = vpack.i.bf16 %v2773_v35, %v2748_v23  ;;  %v985_v2 = vrot.slane %v2678_v11, 2 }
 0x229   :  { %2027 = vrot.lane.b32.xlu1 %v1986_v6, %s2488_s27  ;;  %2002 = vrot.lane.b32.xlu0 %v1981_v18, %s2486_s25  ;;  %v986_v6 = vrot.slane %v2675_v10, 2 }
 0x22a   :  { %1967 = vrot.lane.b32.xlu2 %v1956_v25, %s2486_s25 }
 0x22b   :  { %v1953_v42 = vpop.permute.xlu1 %1952 }
 0x22c   :  { %v1955_v43 = vunpack.i.h.bf16 %v1953_v42  ;;  %v1954_v44 = vunpack.i.l.bf16 %v1953_v42 }
 0x22e   :  { %v2788_v46 = vsel %vm3976_vm0, %v1954_v44, %v1955_v43  ;;  %v2796_v49 = vsel %vm3976_vm0, %v1955_v43, 0.0  ;;  %v2818_v54 = vsel %vm3976_vm0, 0.0, %v1954_v44  ;;  %vm4036_vm0 = vcmask 1043456  }
 0x22f   :  { %v2076_v50 = vpack.i.bf16 %v2796_v49, %v2788_v46  ;;  %v2111_v55 = vpack.i.bf16 %v2818_v54, %v392_v34  ;;  %v2121_v57 = vpack.i.bf16 %v2788_v46, %v392_v34  ;;  %v2126_v58 = vpack.i.bf16 %v2745_v21, %v2796_v49 }
 0x231   :  { %2037 = vrot.lane.b32.xlu1 %v2036_v47, %s2491_s30  ;;  %2012 = vrot.lane.b32.xlu0 %v1981_v18, %s2487_s26 }
 0x232   :  { %1972 = vrot.lane.b32.xlu2 %v1956_v25, %s2487_s26 }
 0x239   :  { %2077 = vrot.lane.b32.xlu1 %v2076_v50, %s2485_s24  ;;  %2022 = vrot.lane.b32.xlu0 %v1981_v18, %s2488_s27 }
 0x23a   :  { %1977 = vrot.lane.b32.xlu2 %v1956_v25, %s2488_s27 }
 0x241   :  { %2087 = vrot.lane.b32.xlu1 %v2076_v50, %s2484_s23  ;;  %2032 = vrot.lane.b32.xlu0 %v2031_v51, %s2491_s30 }
 0x242   :  { %2042 = vrot.lane.b32.xlu2 %v2041_v52, %s2485_s24 }
 0x249   :  { %2097 = vrot.lane.b32.xlu1 %v2076_v50, %s2486_s25  ;;  %2062 = vrot.lane.b32.xlu0 %v2041_v52, %s2488_s27 }
 0x24a   :  { %2047 = vrot.lane.b32.xlu2 %v2041_v52, %s2484_s23 }
 0x251   :  { %2107 = vrot.lane.b32.xlu1 %v2076_v50, %s2487_s26  ;;  %2067 = vrot.lane.b32.xlu0 %v2066_v53, %s2491_s30 }
 0x252   :  { %2052 = vrot.lane.b32.xlu2 %v2041_v52, %s2486_s25 }
 0x259   :  { %2112 = vrot.lane.b32.xlu1 %v2111_v55, %s2488_s27  ;;  %2072 = vrot.lane.b32.xlu0 %v2111_v55, %s2485_s24 }
 0x25a   :  { %2057 = vrot.lane.b32.xlu2 %v2041_v52, %s2487_s26 }
 0x261   :  { %2122 = vrot.lane.b32.xlu1 %v2121_v57, %s2491_s30  ;;  %2082 = vrot.lane.b32.xlu0 %v2111_v55, %s2484_s23 }
 0x262   :  { %2117 = vrot.lane.b32.xlu2 %v2076_v50, %s2488_s27 }
 0x269   :  { %964 = vrot.lane.b32.xlu1 %v2675_v10, %s2487_s26  ;;  %2092 = vrot.lane.b32.xlu0 %v2111_v55, %s2486_s25 }
 0x26a   :  { %2127 = vrot.lane.b32.xlu2 %v2126_v58, %s2491_s30 }
 0x271   :  { %2142 = vrot.lane.b32.xlu1 %v2685_v13, %s2485_s24  ;;  %2102 = vrot.lane.b32.xlu0 %v2111_v55, %s2487_s26 }
 0x272   :  { %2132 = vrot.lane.b32.xlu2 %v2699_v16, %s2489_s28  ;;  %v2161_v16 = vpack.i.bf16 %v986_v6, %v985_v2 }
 0x274   :  { %v1958_v61 = vpop.permute.xlu2 %1957 }
 0x275   :  { %v1960_v18 = vunpack.i.h.bf16 %v1958_v61  ;;  %v1959_v25 = vunpack.i.l.bf16 %v1958_v61 }
 0x279   :  { %940 = vrot.lane.b32.xlu1 %v2675_v10, %s2484_s23  ;;  %2137 = vrot.lane.b32.xlu0 %v2136_v8, %s2489_s28 }
 0x27a   :  { %928 = vrot.lane.b32.xlu2 %v2675_v10, %s2485_s24  ;;  %v2865_v10 = vsel %vm95_vm6, %v1959_v25, %v1960_v18 }
 0x27b   :  { %v1988_v1 = vpop.permute.xlu1 %1987 }
 0x27c   :  { %v1963_v15 = vpop.permute.xlu2 %1962  ;;  %v1990_v29 = vunpack.i.h.bf16 %v1988_v1  ;;  %v1989_v30 = vunpack.i.l.bf16 %v1988_v1 }
 0x27d   :  { %v1965_v51 = vunpack.i.h.bf16 %v1963_v15  ;;  %v1964_v52 = vunpack.i.l.bf16 %v1963_v15 }
 0x27e   :  { %v2874_v47 = vsel %vm95_vm6, %v1989_v30, %v1990_v29 }
 0x27f   :  { %v2889_v1 = vsel %vm108_vm7, %v1964_v52, %v1965_v51 }
 0x281   :  { %2162 = vrot.lane.b32.xlu1 %v2161_v16, %s2491_s30  ;;  %2147 = vrot.lane.b32.xlu0 %v2685_v13, %s2484_s23 }
 0x282   :  { %2152 = vrot.lane.b32.xlu2 %v2685_v13, %s2490_s29 }
 0x283   :  { %v1998_v17 = vpop.permute.xlu1 %1997 }
 0x284   :  { %v1968_v19 = vpop.permute.xlu2 %1967  ;;  %v2000_v53 = vunpack.i.h.bf16 %v1998_v17  ;;  %v1999_v55 = vunpack.i.l.bf16 %v1998_v17 }
 0x286   :  { %v2898_v15 = vsel %vm108_vm7, %v1999_v55, %v2000_v53 }
 0x289   :  { %2157 = vrot.lane.b32.xlu0 %v2156_v20, %s2490_s29  ;;  %2172 = vrot.lane.b32.xlu1 %v2757_v26, %s2490_s29  ;;  %v1970_v20 = vunpack.i.h.bf16 %v1968_v19 }
 0x28a   :  { %2167 = vrot.lane.b32.xlu2 %v2166_v38, %s2491_s30 }
 0x28b   :  { %v2008_v13 = vpop.permute.xlu1 %2007  ;;  %v1983_v31 = vpop.permute.xlu0 %1982 }
 0x28c   :  { %v1985_v34 = vunpack.i.h.bf16 %v1983_v31  ;;  %v1984_v42 = vunpack.i.l.bf16 %v1983_v31  ;;  %v2862_v43 = vpop.permute.xlu2 %1972  ;;  %v2010_v25 = vunpack.i.h.bf16 %v2008_v13  ;;  %v2009_v29 = vunpack.i.l.bf16 %v2008_v13 }
 0x28e   :  { %v2868_v44 = vsel %vm95_vm6, %v1985_v34, %v1989_v30  ;;  %v2871_v45 = vsel %vm95_vm6, %v1960_v18, %v1984_v42  ;;  %v1969_v18 = vunpack.i.l.bf16 %v1968_v19  ;;  %v2931_v53 = vsel %vm3977_vm1, %v2009_v29, %v2010_v25 }
 0x28f   :  { %4012 = vst [vmem:[#allocation11_spill] sm:$0xff] %v2931_v53 }
 0x291   :  { %2182 = vrot.lane.b32.xlu0 %v2778_v39, %s2490_s29  ;;  %2187 = vrot.lane.b32.xlu1 %v2783_v41, %s2490_s29 }
 0x292   :  { %2177 = vrot.lane.b32.xlu2 %v2737_v9, %s2490_s29 }
 0x293   :  { %v2018_v57 = vpop.permute.xlu1 %2017  ;;  %v1993_v58 = vpop.permute.xlu0 %1992 }
 0x294   :  { %v1995_v61 = vunpack.i.h.bf16 %v1993_v58  ;;  %v1994_v0 = vunpack.i.l.bf16 %v1993_v58  ;;  %v2886_v8 = vpop.permute.xlu2 %1977  ;;  %v2019_v25 = vunpack.i.l.bf16 %v2018_v57  ;;  %v61_v58 = vld [vmem:[%s3944_s4] sm:$0x3] }
 0x296   :  { %v2892_v2 = vsel %vm108_vm7, %v1995_v61, %v1999_v55  ;;  %v2895_v6 = vsel %vm108_vm7, %v1965_v51, %v1994_v0  ;;  %v2211_v61 = vpack.i.bf16 %v2788_v46, %v2818_v54  ;;  %v1975_v0 = vunpack.i.h.bf16 %v2862_v43 }
 0x299   :  { %2202 = vrot.lane.b32.xlu0 %v2778_v39, %s2489_s28  ;;  %2192 = vrot.lane.b32.xlu1 %v2757_v26, %s2489_s28  ;;  %v2917_v39 = vsel %vm3977_vm1, %v1969_v18, %v1970_v20  ;;  %v2020_v18 = vunpack.i.h.bf16 %v2018_v57 }
 0x29a   :  { %2197 = vrot.lane.b32.xlu2 %v2737_v9, %s2489_s28  ;;  %4008 = vst [vmem:[#allocation7_spill] sm:$0xff] %v2917_v39 }
 0x29b   :  { %v2910_v30 = vpop.permute.xlu1 %2027  ;;  %v2003_v31 = vpop.permute.xlu0 %2002  ;;  %v2963_v55 = vsel %vm3978_vm4, %v2019_v25, %v2020_v18 }
 0x29c   :  { %v2030_v34 = vunpack.i.h.bf16 %v2910_v30  ;;  %v3953_v42 = vunpack.i.l.bf16 %v2910_v30  ;;  %v2005_v51 = vunpack.i.h.bf16 %v2003_v31  ;;  %v2004_v19 = vunpack.i.l.bf16 %v2003_v31  ;;  %v2914_v52 = vpop.permute.xlu2 %2042  ;;  %4016 = vst [vmem:[#allocation15_spill] sm:$0xff] %v2963_v55 }
 0x29e   :  { %v2920_v26 = vsel %vm3977_vm1, %v2005_v51, %v2009_v29  ;;  %v2925_v9 = vsel %vm3974_vm8, %v3953_v42, %v2030_v34  ;;  %v2928_v13 = vsel %vm3977_vm1, %v1970_v20, %v2004_v19  ;;  %v1974_v20 = vunpack.i.l.bf16 %v2862_v43 }
 0x29f   :  { %4009 = vst [vmem:[#allocation8_spill] sm:$0xff] %v2920_v26  ;;  %v1924_v42 = vunpack.i.l.bf16 %v2717_v59  ;;  %v4019_v59 = vunpack.i.h.bf16 %v2759_v27 }
 0x2a0   :  { %4010 = vst [vmem:[#allocation9_spill] sm:$0xff] %v2925_v9  ;;  %v3014_v9 = vld [vmem:[%s3945_s3] sm:$0x7] }
 0x2a1   :  { %4011 = vst [vmem:[#allocation10_spill] sm:$0xff] %v2928_v13  ;;  %668 = vrot.lane.b32.xlu0 %v2818_v54, %s2491_s30  ;;  %2207 = vrot.lane.b32.xlu1 %v2783_v41, %s2489_s28  ;;  %v2954_v41 = vsel %vm3978_vm4, %v1974_v20, %v1975_v0  ;;  %v1930_v13 = vunpack.i.h.bf16 %v2740_v14  ;;  %v966_v14 = vsel %vm3978_vm4, %v1934_v33, %v4019_v59 }
 0x2a2   :  { %2212 = vrot.lane.b32.xlu2 %v2211_v61, %s2490_s29  ;;  %4013 = vst [vmem:[#allocation12_spill] sm:$0xff] %v2954_v41  ;;  %v970_v41 = vsel %vm2580_vm5, %v966_v14, 0.0 }
 0x2a3   :  { %v2946_v29 = vpop.permute.xlu1 %2037  ;;  %v2013_v31 = vpop.permute.xlu0 %2012  ;;  %812 = vst [vmem:[#allocation1] ss:$9 sm:$0xff] %v3014_v9 }
 0x2a4   :  { %v2015_v34 = vunpack.i.h.bf16 %v2013_v31  ;;  %v2014_v51 = vunpack.i.l.bf16 %v2013_v31  ;;  %v2948_v19 = vpop.permute.xlu2 %2047 }
 0x2a6   :  { %v2957_v43 = vsel %vm3978_vm4, %v2015_v34, %v2019_v25  ;;  %v2960_v57 = vsel %vm3978_vm4, %v1975_v0, %v2014_v51  ;;  %v1980_v0 = vunpack.i.h.bf16 %v2886_v8 }
 0x2a7   :  { %4014 = vst [vmem:[#allocation13_spill] sm:$0xff] %v2957_v43  ;;  %v4022_v43 = vunpack.i.l.bf16 %v2910_v30 }
 0x2a8   :  { %4015 = vst [vmem:[#allocation14_spill] sm:$0xff] %v2960_v57 }
 0x2a9   :  { %712 = vrot.lane.b32.xlu0 %v2796_v49, %s2490_s29  ;;  %808 = vperm.xlu1 %1915, %v61_v58  }
 0x2aa   :  { %2217 = vrot.lane.b32.xlu2 %v2211_v61, %s2489_s28 }
 0x2ab   :  { %v2972_v20 = vpop.permute.xlu1 %2077  ;;  %v2023_v34 = vpop.permute.xlu0 %2022 }
 0x2ac   :  { %v2024_v51 = vunpack.i.l.bf16 %v2023_v34  ;;  %v2975_v18 = vpop.permute.xlu2 %2052  ;;  %v2025_v57 = vunpack.i.h.bf16 %v2023_v34 }
 0x2ae   :  { %v2978_v25 = vsel %vm3974_vm8, %v1980_v0, %v2024_v51  ;;  %v628_v34 = vsel %vm3974_vm8, %v2025_v57, %v4022_v43 }
 0x2af   :  { %4017 = vst [vmem:[#allocation16_spill] sm:$0xff] %v2978_v25 }
 0x2b1   :  { %752 = vrot.lane.b32.xlu0 %v2796_v49, %s2489_s28 }
 0x2b3   :  { %v2984_v58 = vpop.permute.xlu1 %2087  ;;  %v2986_v61 = vpop.permute.xlu0 %2032 }
 0x2b4   :  { %v2988_v31 = vpop.permute.xlu2 %2057  ;;  %v2090_v30 = vunpack.i.h.bf16 %v2984_v58 }
 0x2bb   :  { %v2990_v28 = vpop.permute.xlu1 %2097  ;;  %v2063_v48 = vpop.permute.xlu0 %2062 }
 0x2bc   :  { %v2118_v50 = vpop.permute.xlu2 %2117  ;;  %v2064_v3 = vunpack.i.l.bf16 %v2063_v48 }
 0x2bd   :  { %v2120_v38 = vunpack.i.h.bf16 %v2118_v50  ;;  %v2119_v17 = vunpack.i.l.bf16 %v2118_v50  ;;  %v978_v50 = vsel %vm3974_vm8, %v1924_v42, %v4018_v24  ;;  %v954_v24 = vsel %vm3977_vm1, %v1929_v60, %v1930_v13 }
 0x2be   :  { %v982_v42 = vsel %vm2576_vm3, %v978_v50, 0.0  ;;  %v958_v50 = vsel %vm2576_vm3, %v954_v24, 0.0 }
 0x2bf   :  { %v2993_v51 = vsel %vm3974_vm8, %v2119_v17, %v2120_v38  ;;  %v2065_v38 = vunpack.i.h.bf16 %v2063_v48  ;;  %v1979_v48 = vunpack.i.l.bf16 %v2886_v8  ;;  %v955_v8 = vsel %vm3977_vm1, %v1930_v13, %v2725_v63 }
 0x2c0   :  { %v1062_v63 = vpack.c.bf16 %v982_v42, %v982_v42  ;;  %v2089_v13 = vunpack.i.l.bf16 %v2984_v58  ;;  %v3061_v57 = vrot.slane %v958_v50, 2  ;;  %v959_v58 = vsel %vm2596_vm10, %v955_v8, 0.0 }
 0x2c1   :  { %v630_v26 = vsel %vm3974_vm8, %v2064_v3, %v2065_v38  ;;  %v2050_v3 = vunpack.i.h.bf16 %v2948_v19 }
 0x2c3   :  { %v2995_v16 = vpop.permute.xlu1 %2107  ;;  %v2997_v22 = vpop.permute.xlu0 %2067 }
 0x2c4   :  { %v2999_v49 = vpop.permute.xlu2 %2127 }
 0x2cb   :  { %v2113_v53 = vpop.permute.xlu1 %2112  ;;  %v3009_v25 = vpop.permute.xlu0 %2072 }
 0x2cc   :  { %v2115_v4 = vunpack.i.h.bf16 %v2113_v53  ;;  %v2114_v55 = vunpack.i.l.bf16 %v2113_v53  ;;  %v3016_v39 = vpop.permute.xlu2 %2132 }
 0x2cd   :  { %v2134_v60 = vunpack.i.l.bf16 %v3016_v39 }
 0x2ce   :  { %v632_v33 = vsel %vm3974_vm8, %v2115_v4, %v2119_v17  ;;  %v3047_v23 = vsel %vm3974_vm8, %v2065_v38, %v2114_v55  ;;  %v626_v4 = vsel %vm3974_vm8, %v1979_v48, %v1980_v0  ;;  %v4024_v55 = vunpack.i.h.bf16 %v3016_v39  ;;  %vm3085_vm8 = vmpackc.low %vm2580_vm5, %vm2580_vm5 }
 0x2cf   :  { %v1732_v59 = vpack.c.bf16 %v632_v33, %v630_v26  ;;  %4023 = vst [vmem:[#allocation17_spill] sm:$0xff] %v3047_v23  ;;  %v2049_v26 = vunpack.i.l.bf16 %v2948_v19  ;;  %v1027_v38 = vrot.slane %v970_v41, 4  ;;  %v1735_v14 = vpack.c.bf16 %v628_v34, %v626_v4 }
 0x2d0   :  { %v1040_v43 = vsel %vm212_vm9, %v2134_v60, %v4024_v55  ;;  %v1065_v41 = vsel %vm4027_vm11, %v1062_v63, 0  ;;  %v3080_v60 = vld [vmem:[#allocation1 + $0x12] sm:$0xff]  ;;  %v489_v63 = vsel %vm108_vm7, %v2089_v13, %v2090_v30  ;;  %v2075_v55 = vunpack.i.h.bf16 %v3009_v25 }
 0x2d1   :  { %1733 = vmatpush.bf16.msk.msrb.mxu0 %vm3029_vm14, %v1732_v59  ;;  %v1054_v34 = vsel %vm223_vm13, %v1027_v38, %v1040_v43  ;;  %v486_v8 = vsel %vm108_vm7, %v2049_v26, %v2050_v3  ;;  %vm4030_vm11 = vcmask 1043456   ;;  %v2045_v17 = vunpack.i.h.bf16 %v2914_v52 }
 0x2d2   :  { %v2044_v23 = vunpack.i.l.bf16 %v2914_v52  ;;  %v2079_v30 = vunpack.i.l.bf16 %v2972_v20  ;;  %v2100_v52 = vunpack.i.h.bf16 %v2990_v28 }
 0x2d3   :  { %v3063_v24 = vpop.permute.xlu1 %2122  ;;  %v2083_v0 = vpop.permute.xlu0 %2082 }
 0x2d4   :  { %v2085_v48 = vunpack.i.h.bf16 %v2083_v0  ;;  %v2084_v42 = vunpack.i.l.bf16 %v2083_v0  ;;  %v3065_v33 = vpop.permute.xlu2 %928 }
 0x2d5   :  { %1736 = vmatpush.bf16.msk.msrb.mxu0 %vm3029_vm14, %v1735_v14  ;;  %v1052_v14 = vsel %vm4030_vm11, %v3061_v57, %v1027_v38  ;;  %v3111_v38 = vrot.slane %v959_v58, 2  ;;  %v4032_v58 = vpack.c.bf16 %v2892_v2, %v2889_v1  ;;  %vm3140_vm11 = vmpackc.low %vm2596_vm10, %vm2596_vm10 }
 0x2d6   :  { %v488_v50 = vsel %vm108_vm7, %v2085_v48, %v2089_v13  ;;  %v487_v4 = vsel %vm108_vm7, %v2050_v3, %v2084_v42  ;;  %v1060_v26 = vpack.c.bf16 %v1054_v34, %v1052_v14  ;;  %v2080_v3 = vunpack.i.h.bf16 %v2972_v20 }
 0x2d7   :  { %v1702_v43 = vpack.c.bf16 %v488_v50, %v486_v8  ;;  %v1739_v0 = vpack.c.bf16 %v489_v63, %v487_v4  ;;  %v2055_v13 = vunpack.i.h.bf16 %v2975_v18  ;;  %v2054_v48 = vunpack.i.l.bf16 %v2975_v18 }
 0x2d8   :  { %1737 = vmatmul.msk.bf16.vlgmr.msrb.gmra.mxu0 %vm818_vm12, %v3080_v60  ;;  %v440_v20 = vsel %vm95_vm6, %v2075_v55, %v2079_v30  ;;  %v4031_v8 = vunpack.i.h.bf16 %v2759_v27  ;;  %v4033_v27 = vpack.c.bf16 %v2898_v15, %v2895_v6  ;;  %v438_v55 = vsel %vm95_vm6, %v2044_v23, %v2045_v17 }
 0x2d9   :  { %1074 = vmatpush.bf16.msra.mxu0 %v1065_v41  ;;  %v2074_v41 = vunpack.i.l.bf16 %v3009_v25  ;;  %1703 = vmatpush.bf16.msk.msra.mxu2 %vm3085_vm8, %v1702_v43  ;;  %v2099_v25 = vunpack.i.l.bf16 %v2990_v28  ;;  %v3135_v14 = vsel %vm3977_vm1, %v2054_v48, %v2055_v13  ;;  %v2124_v48 = vunpack.i.l.bf16 %v3063_v24 }
 0x2da   :  { %1740 = vmatpush.bf16.msk.msrb.mxu1 %vm3070_vm15, %v1739_v0  ;;  %v441_v0 = vsel %vm95_vm6, %v2079_v30, %v2080_v3  ;;  %v2125_v30 = vunpack.i.h.bf16 %v3063_v24 }
 0x2db   :  { %v965_v42 = vpop.permute.xlu1 %964  ;;  %v2093_v34 = vpop.permute.xlu0 %2092  ;;  %v439_v43 = vsel %vm95_vm6, %v2045_v17, %v2074_v41  ;;  %v3151_v23 = vsel %vm3977_vm1, %v2099_v25, %v2100_v52  ;;  %v1708_v17 = vpack.c.bf16 %v440_v20, %v438_v55  ;;  %v2070_v52 = vunpack.i.h.bf16 %v2997_v22 }
 0x2dc   :  { %v967_v18 = vsel %vm3978_vm4, %v4031_v8, %v965_v42  ;;  %v2095_v50 = vunpack.i.h.bf16 %v2093_v34  ;;  %v2094_v4 = vunpack.i.l.bf16 %v2093_v34  ;;  %v3117_v63 = vpop.permute.xlu2 %2152  ;;  %v1745_v41 = vpack.c.bf16 %v441_v0, %v439_v43 }
 0x2dd   :  { %1075 = vmatpush.bf16.msra.mxu0 %v1060_v26  ;;  %v971_v28 = vsel %vm2572_vm2, %v967_v18, 0.0  ;;  %1706 = vmatpush.bf16.msk.msra.mxu2 %vm3085_vm8, %v4032_v58  ;;  %v2059_v34 = vunpack.i.l.bf16 %v2988_v31  ;;  %v2110_v20 = vunpack.i.h.bf16 %v2995_v16  ;;  %v2109_v8 = vunpack.i.l.bf16 %v2995_v16 }
 0x2de   :  { %1743 = vmatpush.bf16.msk.msrb.mxu1 %vm3070_vm15, %v4033_v27  ;;  %v1028_v2 = vrot.slane %v971_v28, 4  ;;  %v3145_v6 = vsel %vm3977_vm1, %v2095_v50, %v2099_v25  ;;  %v3148_v15 = vsel %vm3977_vm1, %v2055_v13, %v2094_v4  ;;  %v2060_v13 = vunpack.i.h.bf16 %v2988_v31 }
 0x2df   :  { %v1726_v26 = vpack.c.bf16 %v3145_v6, %v3135_v14  ;;  %v2129_v25 = vunpack.i.l.bf16 %v2999_v49  ;;  %v2130_v18 = vunpack.i.h.bf16 %v2999_v49  ;;  %v4039_v31 = vpack.c.bf16 %v2868_v44, %v2865_v10 }
 0x2e0   :  { %v3161_v42 = vsel %vm4036_vm0, %v3111_v38, %v1028_v2  ;;  %vm4037_vm0 = vcmask 1039360   ;;  %v4040_v16 = vpack.c.bf16 %v2874_v47, %v2871_v45  ;;  %v2035_v55 = vunpack.i.h.bf16 %v2986_v61 }
 0x2e1   :  { %1709 = vmatpush.bf16.msk.msra.mxu2 %vm3029_vm14, %v1708_v17  ;;  %v679_v58 = vsel %vm4037_vm0, %v2070_v52, %v2124_v48  ;;  %vm4038_vm1 = vmmov %vm4037_vm0  ;;  %v2034_v0 = vunpack.i.l.bf16 %v2986_v61  ;;  %v3201_v48 = vsel %vm3978_vm4, %v2059_v34, %v2060_v13  ;;  %v2039_v45 = vunpack.i.l.bf16 %v2946_v29 }
 0x2e2   :  { %1746 = vmatpush.bf16.msk.msrb.mxu1 %vm3140_vm11, %v1745_v41  ;;  %v681_v27 = vsel %vm4038_vm1, %v2125_v30, %v2129_v25  ;;  %vm4041_vm1 = vmmov %vm4037_vm0 }
 0x2e3   :  { %v2143_v50 = vpop.permute.xlu1 %2142  ;;  %v2103_v4 = vpop.permute.xlu0 %2102  ;;  %v777_v44 = vpack.c.bf16 %v681_v27, %v679_v58  ;;  %v675_v47 = vsel %vm4041_vm1, %v2130_v18, %v2034_v0  ;;  %vm4045_vm1 = vcmask 1042432  }
 0x2e4   :  { %v2105_v43 = vunpack.i.h.bf16 %v2103_v4  ;;  %v2104_v28 = vunpack.i.l.bf16 %v2103_v4  ;;  %v3192_v17 = vpop.permute.xlu2 %2167  ;;  %v3210_v4 = vsel %vm3978_vm4, %v2109_v8, %v2110_v20  ;;  %v2145_v34 = vunpack.i.h.bf16 %v2143_v50 }
 0x2e5   :  { %1712 = vmatpush.bf16.msk.msra.mxu2 %vm3029_vm14, %v4039_v31  ;;  %v983_v20 = vsel %vm2596_vm10, %v2723_v62, 0.0  ;;  %v2155_v62 = vunpack.i.h.bf16 %v3117_v63 }
 0x2e6   :  { %1749 = vmatpush.bf16.msk.msrb.mxu1 %vm3140_vm11, %v4040_v16  ;;  %v3195_v41 = vsel %vm3978_vm4, %v2105_v43, %v2109_v8  ;;  %v3198_v10 = vsel %vm3978_vm4, %v2060_v13, %v2104_v28  ;;  %v677_v13 = vsel %vm4037_vm0, %v2035_v55, %v2039_v45  ;;  %v2144_v28 = vunpack.i.l.bf16 %v2143_v50 }
 0x2e7   :  { %v1720_v25 = vpack.c.bf16 %v3195_v41, %v3201_v48  ;;  %v1757_v43 = vpack.c.bf16 %v3210_v4, %v3198_v10  ;;  %v775_v31 = vpack.c.bf16 %v677_v13, %v675_v47  ;;  %v4042_v8 = vunpack.i.h.bf16 %v3016_v39 }
 0x2e8   :  { %v1063_v47 = vpack.c.bf16 %v983_v20, %v983_v20  ;;  %v4043_v13 = vpack.c.bf16 %v2788_v46, %v2773_v35  ;;  %v2154_v39 = vunpack.i.l.bf16 %v3117_v63  ;;  %v4044_v35 = vpack.c.bf16 %v2729_v7, %v2745_v21  ;;  %v3247_v63 = vld [vmem:[#allocation1] sm:$0xff] }
 0x2e9   :  { %v931_v7 = vsel %vm95_vm6, %v2145_v34, %v3065_v33  ;;  %vm4048_vm4 = vcmask 1043456   ;;  %v4079_v4 = vpack.c.bf16 %v3151_v23, %v3148_v15 }
 0x2ea   :  { %864 = vmatpush.bf16.msrb.mxu1 %v777_v44  ;;  %v930_v44 = vsel %vm95_vm6, %v2144_v28, %v2145_v34  ;;  %v1068_v46 = vsel %vm4045_vm1, %v1063_v47, 0  ;;  %vm4047_vm1 = vcmask 1045504  }
 0x2eb   :  { %v941_v58 = vpop.permute.xlu1 %940  ;;  %v3217_v27 = vpop.permute.xlu0 %2137  ;;  %v934_v28 = vsel %vm2576_vm3, %v930_v44, 0.0  ;;  %vm4046_vm3 = vcmask 908288  }
 0x2ec   :  { %v2139_v16 = vunpack.i.l.bf16 %v3217_v27  ;;  %v3228_v50 = vpop.permute.xlu2 %2177 }
 0x2ed   :  { %v2180_v14 = vunpack.i.h.bf16 %v3228_v50  ;;  %v2179_v6 = vunpack.i.l.bf16 %v3228_v50 }
 0x2ee   :  { %865 = vmatpush.bf16.msrb.mxu1 %v775_v31  ;;  %v1041_v0 = vsel %vm212_vm9, %v4042_v8, %v2139_v16  ;;  %v2040_v16 = vunpack.i.h.bf16 %v2946_v29  ;;  %v1015_v29 = vsel %vm4046_vm3, %v2154_v39, %v2155_v62 }
 0x2ef   :  { %v1055_v45 = vsel %vm223_vm13, %v1028_v2, %v1041_v0  ;;  %v999_v0 = vrot.slane %v934_v28, 4 }
 0x2f0   :  { %v1061_v3 = vpack.c.bf16 %v1055_v45, %v3161_v42 }
 0x2f2   :  { %1752 = vmatpush.bf16.msk.msrb.mxu1 %vm3070_vm15, %v4043_v13 }
 0x2f3   :  { %v2163_v31 = vpop.permute.xlu1 %2162  ;;  %v2148_v2 = vpop.permute.xlu0 %2147 }
 0x2f4   :  { %v2164_v8 = vunpack.i.l.bf16 %v2163_v31  ;;  %v2150_v42 = vunpack.i.h.bf16 %v2148_v2  ;;  %v2149_v20 = vunpack.i.l.bf16 %v2148_v2  ;;  %v935_v2 = vsel %vm2596_vm10, %v931_v7, 0.0  ;;  %vm4051_vm10 = vmmov %vm4046_vm3 }
 0x2f5   :  { %vm4052_vm3 = vmmov %vm4047_vm1 }
 0x2f6   :  { %1755 = vmatpush.bf16.msk.msrb.mxu1 %vm3070_vm15, %v4044_v35  ;;  %v993_v44 = vsel %vm4037_vm0, %v2040_v16, %v2164_v8  ;;  %v943_v45 = vsel %vm108_vm7, %v2150_v42, %v941_v58  ;;  %v942_v13 = vsel %vm108_vm7, %v2149_v20, %v2150_v42  ;;  %v2165_v16 = vunpack.i.h.bf16 %v2163_v31  ;;  %v3267_v42 = vpop.permute.xlu2 %2197 }
 0x2f7   :  { %v946_v21 = vsel %vm2580_vm5, %v942_v13, 0.0  ;;  %v1044_v47 = vsel %vm4047_vm1, %v920_v37, %v993_v44  ;;  %v1046_v28 = vsel %vm4048_vm4, %v993_v44, %v999_v0  ;;  %v947_v12 = vsel %vm2572_vm2, %v943_v45, 0.0  ;;  %vm4049_vm5 = vmmov %vm4047_vm1 }
 0x2f8   :  { %v1005_v39 = vrot.slane %v946_v21, 6  ;;  %v1056_v58 = vpack.c.bf16 %v1046_v28, %v1044_v47  ;;  %v1050_v33 = vsel %vm4049_vm5, %v1015_v29, %v3061_v57  ;;  %v1006_v34 = vrot.slane %v947_v12, 6  ;;  %vm4050_vm4 = vmmov %vm4037_vm0 }
 0x2f9   :  { %868 = vmatmul.bf16.vlgmr.msrb.gmra.mxu1 %v3247_v63  ;;  %v1000_v44 = vrot.slane %v935_v2, 4  ;;  %v994_v56 = vsel %vm4050_vm4, %v2164_v8, %v2165_v16  ;;  %v921_v29 = vsel %vm2572_vm2, %v2678_v11, 0.0  ;;  %vm4053_vm0 = vmmov %vm4047_vm1  ;;  %vm4054_vm1 = vcmask 1043456  }
 0x2fa   :  { %1093 = vmatpush.bf16.msra.mxu1 %v1068_v46  ;;  %v1048_v40 = vsel %vm223_vm13, %v999_v0, %v1005_v39  ;;  %v1045_v45 = vsel %vm4053_vm0, %v921_v29, %v994_v56  ;;  %vm4055_vm5 = vcmask 441344   ;;  %v2170_v47 = vunpack.i.h.bf16 %v3192_v17  ;;  %vm4059_vm0 = vmmov %vm4050_vm4 }
 0x2fb   :  { %v3272_v20 = vpop.permute.xlu0 %2157  ;;  %v3274_v35 = vpop.permute.xlu1 %2172  ;;  %v1058_v46 = vpack.c.bf16 %v1050_v33, %v1048_v40  ;;  %v1047_v13 = vsel %vm4054_vm1, %v994_v56, %v1000_v44  ;;  %vm4056_vm2 = vmmov %vm4055_vm5  ;;  %v2169_v12 = vunpack.i.l.bf16 %v3192_v17  ;;  %v2069_v2 = vunpack.i.l.bf16 %v2997_v22  ;;  %v2482_v17 = vld [vmem:[%s3943_s1 + $0x8] sm:$0xff] }
 0x2fc   :  { %v2159_v37 = vunpack.i.l.bf16 %v3272_v20  ;;  %v678_v33 = vsel %vm4050_vm4, %v2170_v47, %v2070_v52  ;;  %v2140_v56 = vunpack.i.h.bf16 %v3217_v27  ;;  %v2200_v52 = vunpack.i.h.bf16 %v3267_v42  ;;  %vm4060_vm1 = vmmov %vm4059_vm0 }
 0x2fd   :  { %1076 = vmatpush.bf16.msra.mxu0 %v1058_v46  ;;  %v676_v22 = vsel %vm4059_vm0, %v2169_v12, %v2035_v55  ;;  %v2199_v24 = vunpack.i.l.bf16 %v3267_v42  ;;  %v674_v27 = vsel %vm4060_vm1, %v2069_v2, %v2130_v18  ;;  %v4065_v12 = vld [vmem:[#allocation12_spill] sm:$0xff]  ;;  %v2160_v2 = vunpack.i.h.bf16 %v3272_v20 }
 0x2fe   :  { %1094 = vmatpush.bf16.msra.mxu1 %v1061_v3  ;;  %v1016_v31 = vsel %vm4051_vm10, %v2155_v62, %v2159_v37  ;;  %v1049_v3 = vsel %vm223_vm13, %v1000_v44, %v1006_v34  ;;  %v2481_v62 = vld [vmem:[%s3943_s1] sm:$0xff]  ;;  %v3295_v21 = vpop.permute.xlu2 %2212  ;;  %vm4057_vm10 = vmmov %vm4050_vm4  ;;  %v774_v55 = vpack.c.bf16 %v676_v22, %v674_v27  ;;  %v2175_v23 = vunpack.i.h.bf16 %v3274_v35 }
 0x2ff   :  { %v1051_v0 = vsel %vm4052_vm3, %v1016_v31, %v3111_v38  ;;  %v1057_v38 = vpack.c.bf16 %v1047_v13, %v1045_v45  ;;  %vm4058_vm3 = vmmov %vm4056_vm2  ;;  %v756_v42 = vsel %vm212_vm9, %v2199_v24, %v2200_v52  ;;  %v1714_v13 = vpack.c.bf16 %v2818_v54, %v2769_v32  ;;  %v4081_v24 = vld [vmem:[#allocation9_spill] sm:$0xff] }
 0x300   :  { %v1059_v57 = vpack.c.bf16 %v1051_v0, %v1049_v3 }
 0x301   :  { %1077 = vmatpush.bf16.msra.mxu0 %v1056_v58 }
 0x302   :  { %1095 = vmatpush.bf16.msra.mxu1 %v1059_v57  ;;  %v3319_v57 = vld [vmem:[#allocation1 + $0x9] sm:$0xff] }
 0x303   :  { %v3287_v7 = vpop.permute.xlu0 %2182  ;;  %v3289_v8 = vpop.permute.xlu1 %2187  ;;  %1592 = vst [vmem:[#allocation1] ss:$9 sm:$0xff] %v3014_v9 }
 0x304   :  { %1777 = vmatmul.msk.bf16.vlgmr.msra.gmra.mxu0 %vm4055_vm5, %v2481_v62  ;;  %vm4061_vm5 = vmmov %vm4056_vm2  ;;  %v2184_v22 = vunpack.i.l.bf16 %v3287_v7 }
 0x306   :  { %1096 = vmatpush.bf16.msra.mxu1 %v1057_v38  ;;  %v2218_v28 = vpop.permute.xlu2 %2217  ;;  %v4062_v38 = vld [vmem:[#allocation6_spill] sm:$0xff] }
 0x307   :  { %v2220_v39 = vunpack.i.h.bf16 %v2218_v28  ;;  %v2219_v58 = vunpack.i.l.bf16 %v2218_v28  ;;  %v4063_v47 = vpack.c.bf16 %v2732_v5, %v4062_v38  ;;  %v4064_v28 = vld [vmem:[#allocation13_spill] sm:$0xff] }
 0x309   :  { %1779 = vmatmul.msk.bf16.vlgmr.msra.gmra.mxu1 %vm4056_vm2, %v2481_v62  ;;  %v760_v3 = vsel %vm212_vm9, %v2219_v58, %v2220_v39  ;;  %v4066_v58 = vpack.c.bf16 %v4064_v28, %v4065_v12  ;;  %vm4067_vm2 = vcmask 908288  }
 0x30a   :  { %vm4071_vm4 = vmmov %vm4067_vm2 }
 0x30b   :  { %v2203_v36 = vpop.permute.xlu0 %2202  ;;  %v2193_v11 = vpop.permute.xlu1 %2192  ;;  %vm4080_vm0 = vmmov %vm4067_vm2 }
 0x30c   :  { %v2205_v34 = vunpack.i.h.bf16 %v2203_v36  ;;  %v2194_v46 = vunpack.i.l.bf16 %v2193_v11  ;;  %v2204_v9 = vunpack.i.l.bf16 %v2203_v36  ;;  %v2195_v18 = vunpack.i.h.bf16 %v2193_v11  ;;  %vm4087_vm1 = vmmov %vm4080_vm0 }
 0x30d   :  { %v2189_v36 = vunpack.i.l.bf16 %v3289_v8 }
 0x30e   :  { %v754_v61 = vsel %vm212_vm9, %v2140_v56, %v2194_v46  ;;  %v755_v48 = vsel %vm212_vm9, %v2194_v46, %v2195_v18  ;;  %v757_v5 = vsel %vm212_vm9, %v2200_v52, %v2204_v9 }
 0x30f   :  { %v798_v45 = vpack.c.bf16 %v756_v42, %v754_v61  ;;  %v799_v11 = vpack.c.bf16 %v757_v5, %v755_v48 }
 0x313   :  { %v669_v16 = vpop.permute.xlu0 %668  ;;  %v2208_v40 = vpop.permute.xlu1 %2207 }
 0x314   :  { %v680_v37 = vsel %vm4057_vm10, %v669_v16, %v2125_v30  ;;  %v2209_v44 = vunpack.i.l.bf16 %v2208_v40  ;;  %1778 = vmatmul.msk.bf16.gmra.mxu0 %vm4058_vm3, %v2482_v17  ;;  %v2210_v49 = vunpack.i.h.bf16 %v2208_v40  ;;  %v2174_v16 = vunpack.i.l.bf16 %v3274_v35  ;;  %vm4072_vm10 = vmmov %vm4067_vm2 }
 0x315   :  { %v776_v31 = vpack.c.bf16 %v680_v37, %v678_v33  ;;  %v4068_v33 = vld [vmem:[#allocation8_spill] sm:$0xff]  ;;  %vm4073_vm3 = vmmov %vm4067_vm2 }
 0x316   :  { %v758_v30 = vsel %vm212_vm9, %v2205_v34, %v2209_v44  ;;  %v759_v54 = vsel %vm212_vm9, %v2209_v44, %v2210_v49  ;;  %v4069_v34 = vld [vmem:[#allocation7_spill] sm:$0xff]  ;;  %v716_v37 = vsel %vm4073_vm3, %v2179_v6, %v2180_v14  ;;  %v4090_v49 = vld [vmem:[#allocation2_spill] sm:$0xff] }
 0x317   :  { %825 = vmatpush.bf16.msra.mxu2 %v776_v31  ;;  %v800_v0 = vpack.c.bf16 %v760_v3, %v758_v30  ;;  %v4070_v46 = vpack.c.bf16 %v4068_v33, %v4069_v34  ;;  %v4074_v44 = vld [vmem:[#allocation15_spill] sm:$0xff]  ;;  %v4077_v31 = vld [vmem:[#allocation17_spill] sm:$0xff]  ;;  %v4082_v30 = vld [vmem:[#allocation16_spill] sm:$0xff] }
 0x318   :  { %v4078_v10 = vpack.c.bf16 %v2993_v51, %v4077_v31  ;;  %v4083_v51 = vpack.c.bf16 %v4081_v24, %v4082_v30  ;;  %v4084_v3 = vld [vmem:[#allocation11_spill] sm:$0xff] }
 0x319   :  { %834 = vmatpush.bf16.msra.mxu3 %v800_v0  ;;  %1780 = vmatmul.msk.bf16.gmra.mxu1 %vm4061_vm5, %v2482_v17  ;;  %v4075_v17 = vld [vmem:[#allocation14_spill] sm:$0xff]  ;;  %vm4088_vm5 = vmmov %vm4080_vm0 }
 0x31a   :  { %v4076_v56 = vpack.c.bf16 %v4074_v44, %v4075_v17  ;;  %v4085_v0 = vld [vmem:[#allocation10_spill] sm:$0xff] }
 0x31b   :  { %v713_v29 = vpop.permute.xlu0 %712  ;;  %826 = vmatpush.bf16.msra.mxu2 %v774_v55  ;;  %v4086_v15 = vpack.c.bf16 %v4084_v3, %v4085_v0  ;;  %v3429_v24 = vpop.permute.xlu1 %808 }
 0x31c   :  { %4094 = vst [vmem:[#allocation6_spill] sm:$0xff] %v3429_v24 }
 0x31d   :  { %835 = vmatpush.bf16.msra.mxu3 %v798_v45 }
 0x31f   :  { %1715 = vmatpush.bf16.msk.msra.mxu2 %vm3085_vm8, %v1714_v13 }
 0x321   :  { %1721 = vmatpush.bf16.msk.msra.mxu3 %vm3085_vm8, %v1720_v25  ;;  %v2185_v25 = vunpack.i.h.bf16 %v3287_v7  ;;  %v717_v7 = vsel %vm4088_vm5, %v2180_v14, %v2184_v22  ;;  %v4093_v14 = vld [vmem:[#allocation3_spill] sm:$0xff] }
 0x323   :  { %v753_v62 = vpop.permute.xlu0 %752  ;;  %1718 = vmatpush.bf16.msk.msra.mxu2 %vm3085_vm8, %v4063_v47  ;;  %v718_v40 = vsel %vm4067_vm2, %v2185_v25, %v2189_v36  ;;  %vm4089_vm2 = vmmov %vm4080_vm0 }
 0x324   :  { %v761_v32 = vsel %vm212_vm9, %v2220_v39, %v753_v62  ;;  %v2215_v39 = vunpack.i.h.bf16 %v3295_v21  ;;  %v715_v61 = vsel %vm4089_vm2, %v2174_v16, %v2175_v23 }
 0x325   :  { %1724 = vmatpush.bf16.msk.msra.mxu3 %vm3085_vm8, %v4066_v58  ;;  %v801_v41 = vpack.c.bf16 %v761_v32, %v759_v54  ;;  %v787_v55 = vpack.c.bf16 %v717_v7, %v715_v61 }
 0x326   :  { %829 = vmatmul.bf16.vlgmr.msra.gmra.mxu2 %v3247_v63  ;;  %v2214_v63 = vunpack.i.l.bf16 %v3295_v21  ;;  %v714_v21 = vsel %vm4072_vm10, %v2160_v2, %v2174_v16  ;;  %v721_v52 = vsel %vm4080_vm0, %v2215_v39, %v713_v29 }
 0x327   :  { %873 = vmatpush.bf16.msrb.mxu2 %v801_v41  ;;  %v786_v50 = vpack.c.bf16 %v716_v37, %v714_v21 }
 0x329   :  { %1727 = vmatpush.bf16.msk.msra.mxu3 %vm3029_vm14, %v1726_v26  ;;  %v720_v26 = vsel %vm4071_vm4, %v2214_v63, %v2215_v39 }
 0x32a   :  { %v788_v20 = vpack.c.bf16 %v720_v26, %v718_v40 }
 0x32b   :  { %874 = vmatpush.bf16.msrb.mxu2 %v799_v11 }
 0x32d   :  { %1730 = vmatpush.bf16.msk.msra.mxu3 %vm3029_vm14, %v4070_v46 }
 0x32f   :  { %1758 = vmatpush.bf16.msk.msrb.mxu2 %vm3070_vm15, %v1757_v43  ;;  %v2190_v43 = vunpack.i.h.bf16 %v3289_v8 }
 0x331   :  { %840 = vmatpush.bf16.msra.mxu3 %v788_v20  ;;  %v719_v8 = vsel %vm4087_vm1, %v2189_v36, %v2190_v43  ;;  %v4092_v36 = vld [vmem:[#allocation5_spill] sm:$0xff] }
 0x332   :  { %v789_v27 = vpack.c.bf16 %v721_v52, %v719_v8 }
 0x333   :  { %1761 = vmatpush.bf16.msk.msrb.mxu2 %vm3070_vm15, %v4076_v56 }
 0x335   :  { %841 = vmatpush.bf16.msra.mxu3 %v786_v50 }
 0x337   :  { %1764 = vmatpush.bf16.msk.msrb.mxu2 %vm3140_vm11, %v4079_v4 }
 0x338   :  { %842 = vmatmul.bf16.vlgmr.msra.gmra.mxu3 %v3319_v57 }
 0x339   :  { %1770 = vmatpush.bf16.msk.msrb.mxu3 %vm3140_vm11, %v4078_v10 }
 0x33b   :  { %1767 = vmatpush.bf16.msk.msrb.mxu2 %vm3140_vm11, %v4086_v15 }
 0x33d   :  { %1773 = vmatpush.bf16.msk.msrb.mxu3 %vm3140_vm11, %v4083_v51 }
 0x33f   :  { %879 = vmatpush.bf16.msrb.mxu2 %v789_v27 }
 0x343   :  { %880 = vmatpush.bf16.msrb.mxu2 %v787_v55 }
 0x346   :  { %881 = vmatmul.bf16.vlgmr.msrb.gmra.mxu2 %v3319_v57  ;;  %v4091_v57 = vld [vmem:[#allocation4_spill] sm:$0xff] }
 0x348   :  { %1774 = vmatmul.msk.bf16.vlgmr.msrb.gmra.mxu3 %vm818_vm12, %v3080_v60 }
 0x355   :  { %v3415_v42 = vpop.f32.mrf.mxu0 }
 0x35d   :  { %v858_v29 = vpop.f32.mrf.mxu0 }
 0x376   :  { %v869_v45 = vpop.f32.mrf.mxu1 }
 0x377   :  { %v870_v30 = vadd.f32 %v869_v45, %v3429_v24 }
 0x37e   :  { %v871_v35 = vpop.f32.mrf.mxu1 }
 0x381   :  { %v1079_v13 = vpop.f32.mrf.mxu0 }
 0x382   :  { %v1080_v9 = vadd.f32 %v1079_v13, %v4090_v49 }
 0x384   :  { %v1116_v62 = vmul.f32 0.1, %v1080_v9  ;;  %vm1108_vm4 = vcmp.ge.f32.partialorder %v1080_v9, 0.0 }
 0x386   :  { %v1098_v18 = vpop.f32.mrf.mxu1  ;;  %v1124_v28 = vsel %vm1108_vm4, %v1080_v9, %v1116_v62 }
 0x387   :  { %v1099_v38 = vadd.f32 %v1098_v18, %v4090_v49 }
 0x389   :  { %vm1109_vm10 = vcmp.ge.f32.partialorder %v1099_v38, 0.0  ;;  %v1117_v47 = vmul.f32 0.1, %v1099_v38  ;;  %v1081_v32 = vpop.f32.mrf.mxu0 }
 0x38a   :  { %v1082_v54 = vadd.f32 %v1081_v32, %v4091_v57 }
 0x38b   :  { %v1125_v60 = vsel %vm1109_vm10, %v1099_v38, %v1117_v47  ;;  %vm4095_vm10 = vcmask 138240  }
 0x38c   :  { %v2221_v12 = vpack.i.bf16 %v1125_v60, %v1124_v28  ;;  %v1118_v41 = vmul.f32 0.1, %v1082_v54  ;;  %vm1110_vm3 = vcmp.ge.f32.partialorder %v1082_v54, 0.0 }
 0x38e   :  { %v1100_v58 = vpop.f32.mrf.mxu1  ;;  %2222 = vrot.lane.b32.xlu2 %v2221_v12, %s2483_s22  ;;  %v1126_v39 = vsel %vm1110_vm3, %v1082_v54, %v1118_v41  ;;  %vm4096_vm3 = vmmov %vm4095_vm10 }
 0x38f   :  { %v1101_v48 = vadd.f32 %v1100_v58, %v4091_v57 }
 0x391   :  { %vm1111_vm0 = vcmp.ge.f32.partialorder %v1101_v48, 0.0  ;;  %v1119_v5 = vmul.f32 0.1, %v1101_v48  ;;  %v1084_v25 = vpop.f32.mrf.mxu0 }
 0x392   :  { %v1085_v11 = vadd.f32 %v1084_v25, %v4092_v36 }
 0x393   :  { %v1127_v63 = vsel %vm1111_vm0, %v1101_v48, %v1119_v5  ;;  %vm4098_vm0 = vmmov %vm4096_vm3 }
 0x394   :  { %v2226_v2 = vpack.i.bf16 %v1127_v63, %v1126_v39  ;;  %v1120_v40 = vmul.f32 0.1, %v1085_v11  ;;  %vm1112_vm1 = vcmp.ge.f32.partialorder %v1085_v11, 0.0 }
 0x396   :  { %v1103_v16 = vpop.f32.mrf.mxu1  ;;  %2227 = vrot.lane.b32.xlu0 %v2226_v2, %s2483_s22  ;;  %v1128_v26 = vsel %vm1112_vm1, %v1085_v11, %v1120_v40  ;;  %vm4099_vm1 = vmmov %vm4098_vm0 }
 0x397   :  { %v1104_v33 = vadd.f32 %v1103_v16, %v4092_v36 }
 0x399   :  { %vm1113_vm5 = vcmp.ge.f32.partialorder %v1104_v33, 0.0  ;;  %v1121_v34 = vmul.f32 0.1, %v1104_v33  ;;  %v1086_v46 = vpop.f32.mrf.mxu0 }
 0x39a   :  { %v1087_v6 = vadd.f32 %v1086_v46, %v4093_v14 }
 0x39b   :  { %v1129_v20 = vsel %vm1113_vm5, %v1104_v33, %v1121_v34  ;;  %vm4100_vm5 = vmmov %vm4098_vm0 }
 0x39c   :  { %v2231_v21 = vpack.i.bf16 %v1129_v20, %v1128_v26  ;;  %v1122_v44 = vmul.f32 0.1, %v1087_v6  ;;  %vm1114_vm2 = vcmp.ge.f32.partialorder %v1087_v6, 0.0 }
 0x39e   :  { %v1105_v37 = vpop.f32.mrf.mxu1  ;;  %2232 = vrot.lane.b32.xlu1 %v2231_v21, %s2483_s22  ;;  %v1130_v50 = vsel %vm1114_vm2, %v1087_v6, %v1122_v44  ;;  %vm4101_vm2 = vmmov %vm4098_vm0 }
 0x39f   :  { %v1106_v17 = vadd.f32 %v1105_v37, %v4093_v14 }
 0x3a1   :  { %vm1115_vm4 = vcmp.ge.f32.partialorder %v1106_v17, 0.0  ;;  %v1123_v56 = vmul.f32 0.1, %v1106_v17 }
 0x3a3   :  { %v1131_v31 = vsel %vm1115_vm4, %v1106_v17, %v1123_v56  ;;  %vm4103_vm4 = vmmov %vm4098_vm0 }
 0x3a4   :  { %v2236_v10 = vpack.i.bf16 %v1131_v31, %v1130_v50 }
 0x3a6   :  { %2237 = vrot.lane.b32.xlu2 %v2236_v10, %s2483_s22 }
 0x3a9   :  { %v830_v4 = vpop.f32.mrf.mxu2 }
 0x3aa   :  { %v831_v51 = vadd.f32 %v830_v4, %v3429_v24 }
 0x3b1   :  { %v832_v43 = vpop.f32.mrf.mxu2 }
 0x3bb   :  { %v843_v22 = vpop.f32.mrf.mxu3 }
 0x3bc   :  { %v844_v0 = vadd.f32 %v843_v22, %v831_v51 }
 0x3be   :  { %v857_v27 = vadd.f32 %v3415_v42, %v844_v0 }
 0x3c3   :  { %v845_v52 = vpop.f32.mrf.mxu3 }
 0x3c9   :  { %v882_v3 = vpop.f32.mrf.mxu2 }
 0x3ca   :  { %v883_v15 = vadd.f32 %v882_v3, %v870_v30 }
 0x3cb   :  { %v895_v23 = vpop.f32.mrf.mxu3 }
 0x3cc   :  { %v896_v8 = vadd.f32 %v895_v23, %v883_v15 }
 0x3ce   :  { %v901_v7 = vrot.slane %v896_v8, 6 }
 0x3d0   :  { %v902_v61 = vsel %vm223_vm13, %v857_v27, %v901_v7 }
 0x3d1   :  { %904 = vst [vmem:[%s3946_s5] sm:$0xf] %v902_v61  ;;  %v884_v55 = vpop.f32.mrf.mxu2 }
 0x3d3   :  { %v897_v29 = vpop.f32.mrf.mxu3 }
 0x3e8   :  { %v2223_v35 = vpop.permute.xlu2 %2222 }
 0x3e9   :  { %v2225_v45 = vunpack.i.h.bf16 %v2223_v35  ;;  %v2224_v13 = vunpack.i.l.bf16 %v2223_v35 }
 0x3eb   :  { %v1176_v49 = vsel %vm4095_vm10, %v2225_v45, 0.0  ;;  %v3440_v9 = vsel %vm4096_vm3, %v2224_v13, %v2225_v45  ;;  %v3443_v18 = vsel %vm4098_vm0, 0.0, %v2224_v13  ;;  %vm4104_vm10 = vmmov %vm4098_vm0 }
 0x3ec   :  { %4097 = vst [vmem:[#allocation13_spill] sm:$0xff] %v3440_v9  ;;  %v2251_v42 = vpack.i.bf16 %v3440_v9, %v3443_v18  ;;  %v3448_v62 = vpack.i.bf16 %v1176_v49, %v3440_v9  ;;  %vm4105_vm3 = vmmov %vm4098_vm0 }
 0x3ee   :  { %2252 = vrot.lane.b32.xlu0 %v2251_v42, %s2485_s24 }
 0x3f6   :  { %2262 = vrot.lane.b32.xlu0 %v2251_v42, %s2484_s23 }
 0x3fe   :  { %2272 = vrot.lane.b32.xlu0 %v2251_v42, %s2486_s25 }
 0x400   :  { %v2238_v38 = vpop.permute.xlu2 %2237 }
 0x401   :  { %v2239_v54 = vunpack.i.l.bf16 %v2238_v38  ;;  %v2240_v16 = vunpack.i.h.bf16 %v2238_v38 }
 0x403   :  { %v3465_v41 = vsel %vm4103_vm4, 0.0, %v2239_v54  ;;  %v3496_v14 = vsel %vm4098_vm0, %v2239_v54, %v2240_v16  ;;  %vm4111_vm4 = vcmask 785408  }
 0x404   :  { %v2391_v4 = vpack.i.bf16 %v3496_v14, %v3465_v41 }
 0x408   :  { %v2228_v47 = vpop.permute.xlu0 %2227 }
 0x409   :  { %v2230_v32 = vunpack.i.h.bf16 %v2228_v47  ;;  %v2229_v57 = vunpack.i.l.bf16 %v2228_v47 }
 0x40b   :  { %v3454_v28 = vsel %vm4099_vm1, 0.0, %v2229_v57  ;;  %v1177_v60 = vsel %vm4100_vm5, %v2230_v32, 0.0  ;;  %v3458_v12 = vsel %vm4101_vm2, %v2229_v57, %v2230_v32  ;;  %vm4107_vm1 = vmmov %vm4098_vm0  ;;  %vm4109_vm2 = vcmask 900096  }
 0x40c   :  { %4102 = vst [vmem:[#allocation12_spill] sm:$0xff] %v3458_v12  ;;  %v3462_v58 = vpack.i.bf16 %v3454_v28, %v3443_v18  ;;  %v3471_v48 = vpack.i.bf16 %v1177_v60, %v1176_v49  ;;  %v2416_v5 = vpack.i.bf16 %v3454_v28, %v3465_v41  ;;  %v3476_v25 = vpack.i.bf16 %v1177_v60, %v3458_v12  ;;  %vm4108_vm5 = vmmov %vm4098_vm0 }
 0x40d   :  { %v2256_v33 = vpack.i.bf16 %v3454_v28, %v1176_v49  ;;  %v2316_v20 = vpack.i.bf16 %v3458_v12, %v3454_v28  ;;  %v2336_v17 = vpack.i.bf16 %v3458_v12, %v1176_v49  ;;  %v1179_v31 = vsel %vm4108_vm5, %v2240_v16, 0.0  ;;  %vm4126_vm5 = vmmov %vm4111_vm4 }
 0x40e   :  { %2247 = vrot.lane.b32.xlu1 %v3462_v58, %s2487_s26  ;;  %2242 = vrot.lane.b32.xlu2 %v3462_v58, %s2489_s28  ;;  %v2386_v10 = vpack.i.bf16 %v1179_v31, %v3496_v14  ;;  %vm4122_vm0 = vcmask 1039360  }
 0x410   :  { %v2233_v36 = vpop.permute.xlu1 %2232 }
 0x411   :  { %v2235_v63 = vunpack.i.h.bf16 %v2233_v36  ;;  %v2234_v2 = vunpack.i.l.bf16 %v2233_v36 }
 0x413   :  { %v3483_v40 = vsel %vm4104_vm10, 0.0, %v2234_v2  ;;  %v3491_v46 = vsel %vm4105_vm3, %v2234_v2, %v2235_v63  ;;  %v1178_v37 = vsel %vm4107_vm1, %v2235_v63, 0.0  ;;  %vm4113_vm10 = vmmov %vm4111_vm4 }
 0x414   :  { %v3488_v34 = vpack.i.bf16 %v3465_v41, %v3483_v40  ;;  %4106 = vst [vmem:[#allocation8_spill] sm:$0xff] %v3491_v46  ;;  %v2341_v21 = vpack.i.bf16 %v3483_v40, %v1177_v60  ;;  %v2351_v44 = vpack.i.bf16 %v3465_v41, %v1178_v37  ;;  %v2346_v56 = vpack.i.bf16 %v3491_v46, %v3483_v40  ;;  %vm4115_vm3 = vmmov %vm4109_vm2 }
 0x415   :  { %v2381_v50 = vpack.i.bf16 %v1178_v37, %v3491_v46  ;;  %v2396_v43 = vpack.i.bf16 %v1179_v31, %v1178_v37  ;;  %vm4123_vm1 = vmmov %vm4122_vm0 }
 0x416   :  { %2257 = vrot.lane.b32.xlu1 %v2256_v33, %s2485_s24  ;;  %2277 = vrot.lane.b32.xlu2 %v2251_v42, %s2491_s30 }
 0x417   :  { %2287 = vrot.lane.b32.xlu0 %v3488_v34, %s2489_s28 }
 0x41e   :  { %2267 = vrot.lane.b32.xlu1 %v2256_v33, %s2484_s23  ;;  %2297 = vrot.lane.b32.xlu2 %v2251_v42, %s2488_s27 }
 0x41f   :  { %2292 = vrot.lane.b32.xlu0 %v3448_v62, %s2487_s26 }
 0x426   :  { %2282 = vrot.lane.b32.xlu1 %v3448_v62, %s2489_s28  ;;  %2307 = vrot.lane.b32.xlu2 %v3476_v25, %s2485_s24 }
 0x427   :  { %2317 = vrot.lane.b32.xlu0 %v2316_v20, %s2491_s30 }
 0x42e   :  { %2302 = vrot.lane.b32.xlu1 %v3488_v34, %s2487_s26  ;;  %2312 = vrot.lane.b32.xlu2 %v3476_v25, %s2484_s23 }
 0x42f   :  { %2332 = vrot.lane.b32.xlu0 %v2316_v20, %s2488_s27 }
 0x436   :  { %2327 = vrot.lane.b32.xlu1 %v3476_v25, %s2487_s26  ;;  %2322 = vrot.lane.b32.xlu2 %v3476_v25, %s2489_s28 }
 0x437   :  { %2342 = vrot.lane.b32.xlu0 %v2341_v21, %s2486_s25 }
 0x43e   :  { %2352 = vrot.lane.b32.xlu1 %v2351_v44, %s2485_s24  ;;  %2337 = vrot.lane.b32.xlu2 %v2336_v17, %s2486_s25 }
 0x43f   :  { %2347 = vrot.lane.b32.xlu0 %v2346_v56, %s2485_s24 }
 0x446   :  { %2362 = vrot.lane.b32.xlu1 %v2346_v56, %s2491_s30  ;;  %2382 = vrot.lane.b32.xlu2 %v2381_v50, %s2486_s25 }
 0x447   :  { %2357 = vrot.lane.b32.xlu0 %v2346_v56, %s2484_s23 }
 0x44e   :  { %2372 = vrot.lane.b32.xlu1 %v2381_v50, %s2487_s26  ;;  %2387 = vrot.lane.b32.xlu2 %v2386_v10, %s2485_s24 }
 0x44f   :  { %2367 = vrot.lane.b32.xlu0 %v2381_v50, %s2489_s28 }
 0x456   :  { %2392 = vrot.lane.b32.xlu1 %v2391_v4, %s2484_s23  ;;  %2397 = vrot.lane.b32.xlu2 %v2396_v43, %s2484_s23 }
 0x457   :  { %2377 = vrot.lane.b32.xlu0 %v2346_v56, %s2488_s27 }
 0x45e   :  { %2407 = vrot.lane.b32.xlu1 %v2386_v10, %s2489_s28  ;;  %2402 = vrot.lane.b32.xlu2 %v2391_v4, %s2491_s30 }
 0x45f   :  { %2437 = vrot.lane.b32.xlu0 %v2386_v10, %s2486_s25 }
 0x460   :  { %v2253_v52 = vpop.permute.xlu0 %2252 }
 0x461   :  { %v2255_v8 = vunpack.i.h.bf16 %v2253_v52  ;;  %v2254_v27 = vunpack.i.l.bf16 %v2253_v52 }
 0x463   :  { %v3590_v13 = vsel %vm95_vm6, %v2254_v27, %v2255_v8 }
 0x466   :  { %2422 = vrot.lane.b32.xlu1 %v3471_v48, %s2491_s30  ;;  %2412 = vrot.lane.b32.xlu2 %v2386_v10, %s2487_s26 }
 0x467   :  { %2457 = vrot.lane.b32.xlu0 %v2396_v43, %s2488_s27 }
 0x468   :  { %v3555_v22 = vpop.permute.xlu2 %2242  ;;  %v3564_v51 = vpop.permute.xlu0 %2262 }
 0x46e   :  { %2432 = vrot.lane.b32.xlu1 %v2391_v4, %s2488_s27  ;;  %2417 = vrot.lane.b32.xlu2 %v2416_v5, %s2486_s25 }
 0x46f   :  { %2462 = vrot.lane.b32.xlu0 %v2386_v10, %s2490_s29 }
 0x470   :  { %v3560_v30 = vpop.permute.xlu2 %2277  ;;  %v3578_v23 = vpop.permute.xlu0 %2272 }
 0x476   :  { %2442 = vrot.lane.b32.xlu1 %v2396_v43, %s2491_s30  ;;  %2427 = vrot.lane.b32.xlu2 %v2381_v50, %s2490_s29 }
 0x477   :  { %2467 = vrot.lane.b32.xlu0 %v3476_v25, %s2490_s29 }
 0x478   :  { %v3568_v3 = vpop.permute.xlu2 %2297 }
 0x47e   :  { %2447 = vrot.lane.b32.xlu1 %v3471_v48, %s2488_s27  ;;  %2452 = vrot.lane.b32.xlu2 %v3448_v62, %s2490_s29  ;;  %v3979_v48 = vunpack.i.h.bf16 %v3578_v23  ;;  %v2265_v62 = vunpack.i.h.bf16 %v3564_v51 }
 0x480   :  { %v3574_v0 = vpop.permute.xlu1 %2247  ;;  %v3576_v15 = vpop.permute.xlu2 %2307 }
 0x481   :  { %v3984_v55 = vunpack.i.l.bf16 %v3576_v15 }
 0x486   :  { %2472 = vrot.lane.b32.xlu1 %v3488_v34, %s2490_s29  ;;  %2477 = vrot.lane.b32.xlu2 %v3462_v58, %s2490_s29 }
 0x488   :  { %v2258_v7 = vpop.permute.xlu1 %2257  ;;  %v3584_v61 = vpop.permute.xlu2 %2312 }
 0x489   :  { %v2260_v29 = vunpack.i.h.bf16 %v2258_v7  ;;  %v2259_v35 = vunpack.i.l.bf16 %v2258_v7  ;;  %v3587_v45 = vpop.permute.xlu0 %2287 }
 0x48b   :  { %v3593_v49 = vsel %vm95_vm6, %v2255_v8, %v2259_v35  ;;  %v3598_v42 = vsel %vm95_vm6, %v2260_v29, %v3984_v55  ;;  %v2315_v55 = vunpack.i.h.bf16 %v3584_v61 }
 0x490   :  { %v3602_v38 = vpop.permute.xlu1 %2267  ;;  %v3604_v47 = vpop.permute.xlu2 %2322 }
 0x491   :  { %v3606_v32 = vpop.permute.xlu0 %2292  ;;  %v2325_v57 = vunpack.i.h.bf16 %v3604_v47  ;;  %v3983_v54 = vunpack.i.l.bf16 %v3604_v47 }
 0x492   :  { %v2295_v37 = vunpack.i.h.bf16 %v3606_v32  ;;  %v3981_v44 = vunpack.i.l.bf16 %v3606_v32 }
 0x493   :  { %v3633_v33 = vsel %vm212_vm9, %v3983_v54, %v2325_v57  ;;  %v2264_v54 = vunpack.i.l.bf16 %v3564_v51 }
 0x494   :  { %v3656_v52 = vsel %vm4111_vm4, %v3981_v44, %v2295_v37 }
 0x495   :  { %4112 = vst [vmem:[#allocation15_spill] sm:$0xff] %v3656_v52 }
 0x498   :  { %v3610_v60 = vpop.permute.xlu1 %2282  ;;  %v3612_v58 = vpop.permute.xlu2 %2337 }
 0x499   :  { %v2285_v5 = vunpack.i.h.bf16 %v3610_v60  ;;  %v3985_v25 = vunpack.i.l.bf16 %v3610_v60  ;;  %v2339_v36 = vunpack.i.l.bf16 %v3612_v58  ;;  %v3618_v63 = vpop.permute.xlu0 %2317  ;;  %v3980_v4 = vunpack.i.h.bf16 %v3612_v58 }
 0x49b   :  { %v3623_v2 = vsel %vm4109_vm2, %v3979_v48, %v2339_v36  ;;  %v3628_v16 = vsel %vm212_vm9, %v3985_v25, %v2285_v5  ;;  %v2269_v48 = vunpack.i.l.bf16 %v3602_v38  ;;  %v2314_v25 = vunpack.i.l.bf16 %v3584_v61  ;;  %vm4127_vm2 = vmmov %vm4122_vm0 }
 0x49c   :  { %4110 = vst [vmem:[#allocation7_spill] sm:$0xff] %v3623_v2 }
 0x49d   :  { %v1269_v12 = vsel %vm108_vm7, %v2265_v62, %v2269_v48 }
 0x4a0   :  { %v3637_v20 = vpop.permute.xlu1 %2302  ;;  %v3643_v17 = vpop.permute.xlu2 %2382 }
 0x4a1   :  { %v3639_v21 = vpop.permute.xlu0 %2332 }
 0x4a8   :  { %v3645_v56 = vpop.permute.xlu1 %2327  ;;  %v2388_v57 = vpop.permute.xlu2 %2387 }
 0x4a9   :  { %v2330_v50 = vunpack.i.h.bf16 %v3645_v56  ;;  %v3982_v31 = vunpack.i.l.bf16 %v3645_v56  ;;  %v3649_v10 = vpop.permute.xlu0 %2342  ;;  %v2390_v61 = vunpack.i.h.bf16 %v2388_v57 }
 0x4aa   :  { %v2344_v43 = vunpack.i.l.bf16 %v3649_v10 }
 0x4ab   :  { %v3661_v8 = vsel %vm4113_vm10, %v3982_v31, %v2330_v50  ;;  %vm4130_vm10 = vmmov %vm4126_vm5 }
 0x4ac   :  { %4114 = vst [vmem:[#allocation14_spill] sm:$0xff] %v3661_v8  ;;  %v3668_v7 = vsel %vm4115_vm3, %v3980_v4, %v2344_v43  ;;  %v2270_v43 = vunpack.i.h.bf16 %v3602_v38 }
 0x4ad   :  { %4116 = vst [vmem:[#allocation17_spill] sm:$0xff] %v3668_v7 }
 0x4ae   :  { %v1270_v51 = vsel %vm108_vm7, %v2270_v43, %v2314_v25 }
 0x4b0   :  { %v2353_v35 = vpop.permute.xlu1 %2352  ;;  %v2398_v39 = vpop.permute.xlu2 %2397 }
 0x4b1   :  { %v2348_v5 = vpop.permute.xlu0 %2347  ;;  %v2400_v6 = vunpack.i.h.bf16 %v2398_v39  ;;  %v2399_v4 = vunpack.i.l.bf16 %v2398_v39  ;;  %v2354_v7 = vunpack.i.l.bf16 %v2353_v35  ;;  %v2355_v52 = vunpack.i.h.bf16 %v2353_v35 }
 0x4b2   :  { %v2350_v39 = vunpack.i.h.bf16 %v2348_v5  ;;  %v2349_v8 = vunpack.i.l.bf16 %v2348_v5 }
 0x4b4   :  { %v1225_v35 = vsel %vm95_vm6, %v2350_v39, %v2354_v7 }
 0x4b8   :  { %v3672_v36 = vpop.permute.xlu1 %2362  ;;  %v3678_v27 = vpop.permute.xlu2 %2402 }
 0x4b9   :  { %v2358_v37 = vpop.permute.xlu0 %2357 }
 0x4ba   :  { %v2360_v34 = vunpack.i.h.bf16 %v2358_v37  ;;  %v2359_v11 = vunpack.i.l.bf16 %v2358_v37 }
 0x4bc   :  { %v1273_v24 = vsel %vm108_vm7, %v2360_v34, %v2399_v4  ;;  %v1272_v37 = vsel %vm108_vm7, %v2359_v11, %v2360_v34  ;;  %v2389_v4 = vunpack.i.l.bf16 %v2388_v57  ;;  %v2244_v11 = vunpack.i.l.bf16 %v3555_v22 }
 0x4bd   :  { %v2290_v34 = vunpack.i.h.bf16 %v3587_v45  ;;  %v2289_v57 = vunpack.i.l.bf16 %v3587_v45 }
 0x4be   :  { %v1226_v5 = vsel %vm95_vm6, %v2355_v52, %v2389_v4  ;;  %v1227_v43 = vsel %vm95_vm6, %v2389_v4, %v2390_v61 }
 0x4c0   :  { %v3674_v50 = vpop.permute.xlu1 %2372  ;;  %v3701_v48 = vpop.permute.xlu2 %2412 }
 0x4c1   :  { %v3676_v26 = vpop.permute.xlu0 %2367  ;;  %v2374_v61 = vunpack.i.l.bf16 %v3674_v50  ;;  %v2414_v4 = vunpack.i.l.bf16 %v3701_v48 }
 0x4c8   :  { %v2393_v29 = vpop.permute.xlu1 %2392 }
 0x4c9   :  { %v2395_v44 = vunpack.i.h.bf16 %v2393_v29  ;;  %v2394_v31 = vunpack.i.l.bf16 %v2393_v29  ;;  %v3692_v46 = vpop.permute.xlu0 %2377 }
 0x4cb   :  { %v1274_v2 = vsel %vm108_vm7, %v2394_v31, %v2395_v44  ;;  %v1275_v38 = vsel %vm108_vm7, %v2395_v44, %v2400_v6  ;;  %v1271_v6 = vsel %vm108_vm7, %v2314_v25, %v2315_v55  ;;  %v2310_v25 = vunpack.i.h.bf16 %v3576_v15 }
 0x4cc   :  { %v1782_v9 = vpack.c.bf16 %v1274_v2, %v1272_v37  ;;  %v1819_v29 = vpack.c.bf16 %v1275_v38, %v1273_v24  ;;  %v1268_v24 = vsel %vm108_vm7, %v2264_v54, %v2265_v62  ;;  %v2369_v2 = vunpack.i.l.bf16 %v3676_v26  ;;  %vm4121_vm7 = vmmov %vm4111_vm4 }
 0x4cd   :  { %v1785_v44 = vpack.c.bf16 %v1270_v51, %v1268_v24  ;;  %v1822_v31 = vpack.c.bf16 %v1271_v6, %v1269_v12  ;;  %v1224_v62 = vsel %vm95_vm6, %v2349_v8, %v2350_v39  ;;  %v2245_v54 = vunpack.i.h.bf16 %v3555_v22 }
 0x4ce   :  { %1783 = vmatpush.bf16.msk.msra.mxu3 %vm3085_vm8, %v1782_v9  ;;  %1820 = vmatpush.bf16.msk.msrb.mxu1 %vm3070_vm15, %v1819_v29  ;;  %v1825_v12 = vpack.c.bf16 %v1227_v43, %v1225_v35  ;;  %v1544_v45 = vsel %vm212_vm9, %v2289_v57, %v2369_v2  ;;  %v4117_v22 = vunpack.i.l.bf16 %v3610_v60  ;;  %v1788_v7 = vpack.c.bf16 %v1226_v5, %v1224_v62 }
 0x4cf   :  { %v2365_v37 = vunpack.i.h.bf16 %v3672_v36  ;;  %v2364_v38 = vunpack.i.l.bf16 %v3672_v36  ;;  %v2405_v29 = vunpack.i.h.bf16 %v3678_v27  ;;  %v2404_v51 = vunpack.i.l.bf16 %v3678_v27 }
 0x4d0   :  { %v3706_v9 = vpop.permute.xlu1 %2407  ;;  %v1540_v8 = vsel %vm212_vm9, %v2244_v11, %v4117_v22  ;;  %v4118_v60 = vunpack.i.l.bf16 %v3576_v15  ;;  %v2305_v24 = vunpack.i.h.bf16 %v3637_v20  ;;  %v2304_v6 = vunpack.i.l.bf16 %v3637_v20 }
 0x4d1   :  { %v2409_v55 = vunpack.i.l.bf16 %v3706_v9  ;;  %v2320_v57 = vunpack.i.h.bf16 %v3618_v63  ;;  %v2319_v15 = vunpack.i.l.bf16 %v3618_v63  ;;  %v2280_v43 = vunpack.i.h.bf16 %v3560_v30 }
 0x4d2   :  { %1786 = vmatpush.bf16.msk.msra.mxu3 %vm3085_vm8, %v1785_v44  ;;  %1823 = vmatpush.bf16.msk.msrb.mxu1 %vm3070_vm15, %v1822_v31  ;;  %v1223_v11 = vsel %vm95_vm6, %v4118_v60, %v2310_v25  ;;  %v4119_v44 = vunpack.i.l.bf16 %v3604_v47  ;;  %vm4120_vm6 = vmmov %vm4111_vm4  ;;  %v1370_v25 = vsel %vm4121_vm7, %v2305_v24, %v2414_v4  ;;  %v2418_v47 = vpop.permute.xlu2 %2417  ;;  %v2334_v60 = vunpack.i.l.bf16 %v3639_v21 }
 0x4d3   :  { %v1546_v52 = vsel %vm212_vm9, %v2290_v34, %v2409_v55  ;;  %v3741_v34 = vpop.permute.xlu0 %2437  ;;  %v1828_v35 = vpack.c.bf16 %v1223_v11, %v3593_v49  ;;  %v1368_v20 = vsel %vm4120_vm6, %v2304_v6, %v2374_v61  ;;  %v1464_v49 = vsel %vm4122_vm0, %v2364_v38, %v2365_v37  ;;  %vm4128_vm4 = vmmov %vm4122_vm0 }
 0x4d4   :  { %v1586_v39 = vpack.c.bf16 %v1546_v52, %v1544_v45  ;;  %v1542_v31 = vsel %vm212_vm9, %v2245_v54, %v4119_v44  ;;  %v1466_v54 = vsel %vm4123_vm1, %v2404_v51, %v2405_v29  ;;  %v4124_v45 = vpack.c.bf16 %v3598_v42, %v3590_v13  ;;  %vm4132_vm7 = vmmov %vm4115_vm3 }
 0x4d5   :  { %v1584_v62 = vpack.c.bf16 %v1542_v31, %v1540_v8  ;;  %v2250_v52 = vunpack.i.h.bf16 %v3574_v0  ;;  %v1800_v22 = vpack.c.bf16 %v1370_v25, %v1368_v20  ;;  %v1562_v8 = vpack.c.bf16 %v1466_v54, %v1464_v49 }
 0x4d6   :  { %1789 = vmatpush.bf16.msk.msra.mxu3 %vm3029_vm14, %v1788_v7  ;;  %1613 = vmatpush.bf16.msrb.mxu0 %v1586_v39  ;;  %v2249_v7 = vunpack.i.l.bf16 %v3574_v0  ;;  %v4125_v38 = vunpack.i.l.bf16 %v3645_v56  ;;  %v2439_v51 = vunpack.i.l.bf16 %v3741_v34  ;;  %v1462_v13 = vsel %vm4127_vm2, %v2319_v15, %v2320_v57 }
 0x4d7   :  { %1826 = vmatpush.bf16.msk.msrb.mxu1 %vm3140_vm11, %v1825_v12  ;;  %v2279_v12 = vunpack.i.l.bf16 %v3560_v30  ;;  %v2335_v42 = vunpack.i.h.bf16 %v3639_v21  ;;  %v2345_v11 = vunpack.i.h.bf16 %v3649_v10  ;;  %v4129_v56 = vunpack.i.l.bf16 %v3606_v32 }
 0x4d8   :  { %v3751_v5 = vpop.permute.xlu1 %2422  ;;  %v1366_v39 = vsel %vm4126_vm5, %v2250_v52, %v4125_v38  ;;  %v2419_v6 = vunpack.i.l.bf16 %v2418_v47  ;;  %v2380_v44 = vunpack.i.h.bf16 %v3692_v46  ;;  %v2379_v31 = vunpack.i.l.bf16 %v3692_v46  ;;  %vm4136_vm5 = vmmov %vm4115_vm3 }
 0x4d9   :  { %v1460_v0 = vsel %vm4128_vm4, %v2279_v12, %v2280_v43  ;;  %v1364_v24 = vsel %vm4130_vm10, %v2249_v7, %v4129_v56  ;;  %v2384_v10 = vunpack.i.l.bf16 %v3643_v17  ;;  %v2420_v25 = vunpack.i.h.bf16 %v2418_v47  ;;  %vm4141_vm10 = vmmov %vm4115_vm3 }
 0x4da   :  { %1792 = vmatpush.bf16.msk.msra.mxu3 %vm3029_vm14, %v4124_v45  ;;  %1614 = vmatpush.bf16.msrb.mxu0 %v1584_v62  ;;  %v1803_v15 = vpack.c.bf16 %v1366_v39, %v1364_v24  ;;  %v1560_v20 = vpack.c.bf16 %v1462_v13, %v1460_v0  ;;  %v1322_v49 = vsel %vm4115_vm3, %v2419_v6, %v2439_v51  ;;  %v2300_v45 = vunpack.i.h.bf16 %v3568_v3  ;;  %v3814_v38 = vpop.permute.xlu2 %2427 }
 0x4db   :  { %1829 = vmatpush.bf16.msk.msrb.mxu1 %vm3140_vm11, %v1828_v35  ;;  %v2274_v35 = vunpack.i.l.bf16 %v3578_v23  ;;  %v2458_v32 = vpop.permute.xlu0 %2457  ;;  %v2299_v52 = vunpack.i.l.bf16 %v3568_v3  ;;  %vm4131_vm6 = vcmask 769024   ;;  %v2370_v47 = vunpack.i.h.bf16 %v3676_v26  ;;  %v1593_v26 = vld [vmem:[#allocation1] sm:$0xff] }
 0x4dc   :  { %v1414_v46 = vsel %vm4131_vm6, %v2334_v60, %v2335_v42  ;;  %vm4133_vm0 = vmmov %vm4131_vm6  ;;  %v2410_v7 = vunpack.i.h.bf16 %v3706_v9  ;;  %v2460_v60 = vunpack.i.h.bf16 %v2458_v32  ;;  %v2459_v0 = vunpack.i.l.bf16 %v2458_v32 }
 0x4dd   :  { %vm4134_vm1 = vmmov %vm4133_vm0  ;;  %v4150_v30 = vpack.c.bf16 %v3633_v33, %v3628_v16 }
 0x4de   :  { %1604 = vmatpush.bf16.msra.mxu3 %v1562_v8  ;;  %1801 = vmatpush.bf16.msk.msrb.mxu0 %vm3085_vm8, %v1800_v22  ;;  %v1320_v22 = vsel %vm4132_vm7, %v2345_v11, %v2384_v10  ;;  %v1416_v8 = vsel %vm4133_vm0, %v2379_v31, %v2380_v44  ;;  %v4135_v11 = vunpack.i.h.bf16 %v3612_v58  ;;  %vm4137_vm2 = vmmov %vm4133_vm0  ;;  %vm4148_vm7 = vcmask 785408  }
 0x4df   :  { %v1806_v13 = vpack.c.bf16 %v1322_v49, %v1320_v22  ;;  %v1412_v6 = vsel %vm4137_vm2, %v2299_v52, %v2300_v45  ;;  %vm4138_vm4 = vmmov %vm4133_vm0  ;;  %v2425_v49 = vunpack.i.h.bf16 %v3751_v5 }
 0x4e0   :  { %v2433_v62 = vpop.permute.xlu1 %2432  ;;  %v1318_v24 = vsel %vm4136_vm5, %v2420_v25, %v4135_v11  ;;  %v1547_v25 = vsel %vm212_vm9, %v2409_v55, %v2410_v7  ;;  %vm4142_vm3 = vmmov %vm4133_vm0  ;;  %v4143_v55 = vpack.c.bf16 %v3454_v28, %v3443_v18  ;;  %v1595_v28 = vld [vmem:[#allocation1 + $0x12] sm:$0xff] }
 0x4e1   :  { %v2435_v54 = vunpack.i.h.bf16 %v2433_v62  ;;  %v2434_v12 = vunpack.i.l.bf16 %v2433_v62  ;;  %v4140_v62 = vunpack.i.h.bf16 %v3578_v23  ;;  %v1417_v32 = vsel %vm4142_vm3, %v2380_v44, %v2459_v0  ;;  %vm4149_vm0 = vmmov %vm4148_vm7 }
 0x4e2   :  { %1605 = vmatpush.bf16.msra.mxu3 %v1560_v20  ;;  %1804 = vmatpush.bf16.msk.msrb.mxu0 %vm3085_vm8, %v1803_v15  ;;  %v4139_v15 = vpack.c.bf16 %v3465_v41, %v3483_v40  ;;  %v1815_v20 = vpack.c.bf16 %v1414_v46, %v1412_v6  ;;  %v1545_v41 = vsel %vm212_vm9, %v2369_v2, %v2370_v47  ;;  %v2375_v2 = vunpack.i.h.bf16 %v3674_v50  ;;  %v3864_v22 = vpop.permute.xlu2 %2452  ;;  %vm4151_vm5 = vmmov %vm4134_vm1  ;;  %v4159_v6 = vld [vmem:[#allocation12_spill] sm:$0xff] }
 0x4e3   :  { %v1418_v39 = vsel %vm4134_vm1, %v2434_v12, %v2435_v54  ;;  %v1419_v31 = vsel %vm4138_vm4, %v2435_v54, %v2460_v60  ;;  %v1316_v58 = vsel %vm4141_vm10, %v2274_v35, %v4140_v62  ;;  %v2424_v35 = vunpack.i.l.bf16 %v3751_v5  ;;  %v2463_v5 = vpop.permute.xlu0 %2462  ;;  %vm4154_vm2 = vmmov %vm4141_vm10 }
 0x4e4   :  { %v1812_v56 = vpack.c.bf16 %v1418_v39, %v1416_v8  ;;  %v1809_v40 = vpack.c.bf16 %v1318_v24, %v1316_v58  ;;  %v1849_v54 = vpack.c.bf16 %v1419_v31, %v1417_v32  ;;  %v1587_v52 = vpack.c.bf16 %v1547_v25, %v1545_v41  ;;  %vm4155_vm4 = vmmov %vm4154_vm2  ;;  %v4156_v39 = vld [vmem:[#allocation14_spill] sm:$0xff]  ;;  %v4160_v31 = vld [vmem:[#allocation13_spill] sm:$0xff] }
 0x4e5   :  { %v2415_v44 = vunpack.i.h.bf16 %v3701_v48  ;;  %vm4144_vm9 = vcmask 1039360   ;;  %v1369_v27 = vsel %vm4148_vm7, %v2374_v61, %v2375_v2  ;;  %v2440_v8 = vunpack.i.h.bf16 %v3741_v34 }
 0x4e6   :  { %1795 = vmatpush.bf16.msk.msra.mxu3 %vm3085_vm8, %v4139_v15  ;;  %1807 = vmatpush.bf16.msk.msrb.mxu0 %vm3029_vm14, %v1806_v13  ;;  %v2385_v61 = vunpack.i.h.bf16 %v3643_v17  ;;  %v4157_v13 = vld [vmem:[#allocation15_spill] sm:$0xff]  ;;  %v2464_v0 = vunpack.i.l.bf16 %v2463_v5  ;;  %v4161_v17 = vpack.c.bf16 %v4159_v6, %v4160_v31  ;;  %v2465_v15 = vunpack.i.h.bf16 %v2463_v5 }
 0x4e7   :  { %1813 = vmatpush.bf16.msk.msra.mxu2 %vm3029_vm14, %v1812_v56  ;;  %v1323_v3 = vsel %vm4154_vm2, %v2439_v51, %v2440_v8  ;;  %vm4162_vm10 = vcmask 908288   ;;  %v2430_v25 = vunpack.i.h.bf16 %v3814_v38  ;;  %v2454_v41 = vunpack.i.l.bf16 %v3864_v22 }
 0x4e8   :  { %v2443_v23 = vpop.permute.xlu1 %2442  ;;  %vm4163_vm3 = vmmov %vm4162_vm10 }
 0x4e9   :  { %v2445_v12 = vunpack.i.h.bf16 %v2443_v23  ;;  %v2444_v9 = vunpack.i.l.bf16 %v2443_v23  ;;  %v4167_v23 = vld [vmem:[#allocation17_spill] sm:$0xff] }
 0x4ea   :  { %1798 = vmatpush.bf16.msk.msra.mxu3 %vm3085_vm8, %v4143_v55  ;;  %1810 = vmatpush.bf16.msk.msrb.mxu0 %vm3029_vm14, %v1809_v40  ;;  %vm4145_vm8 = vmmov %vm4144_vm9  ;;  %v2478_v21 = vpop.permute.xlu2 %2477  ;;  %v1594_v55 = vld [vmem:[#allocation1 + $0x9] sm:$0xff] }
 0x4eb   :  { %1816 = vmatpush.bf16.msk.msra.mxu2 %vm3029_vm14, %v1815_v20  ;;  %v1465_v18 = vsel %vm4144_vm9, %v2365_v37, %v2444_v9  ;;  %v1467_v59 = vsel %vm4145_vm8, %v2405_v29, %v2445_v12  ;;  %vm4146_vm14 = vmmov %vm4145_vm8  ;;  %v1371_v37 = vsel %vm4149_vm0, %v2414_v4, %v2415_v44  ;;  %v2468_v33 = vpop.permute.xlu0 %2467  ;;  %v4152_v4 = vld [vmem:[#allocation8_spill] sm:$0xff]  ;;  %v2480_v51 = vunpack.i.h.bf16 %v2478_v21 }
 0x4ec   :  { %v1563_v46 = vpack.c.bf16 %v1467_v59, %v1465_v18  ;;  %v1461_v53 = vsel %vm4146_vm14, %v2280_v43, %v2424_v35  ;;  %vm4147_vm6 = vmmov %vm4145_vm8  ;;  %v4153_v7 = vpack.c.bf16 %v3496_v14, %v4152_v4  ;;  %v4158_v14 = vpack.c.bf16 %v4156_v39, %v4157_v13  ;;  %v4168_v35 = vld [vmem:[#allocation7_spill] sm:$0xff] }
 0x4ed   :  { %1608 = vmatmul.bf16.vlgmr.msra.gmra.mxu3 %v1593_v26  ;;  %v1463_v36 = vsel %vm4147_vm6, %v2320_v57, %v2425_v49  ;;  %v1837_v57 = vpack.c.bf16 %v1371_v37, %v1369_v27  ;;  %v2469_v56 = vunpack.i.l.bf16 %v2468_v33  ;;  %vm4164_vm9 = vmmov %vm4163_vm3  ;;  %v2470_v19 = vunpack.i.h.bf16 %v2468_v33  ;;  %v4173_v37 = vld [vmem:[#allocation6_spill] sm:$0xff] }
 0x4ee   :  { %1850 = vmatpush.bf16.msk.msrb.mxu3 %vm3140_vm11, %v1849_v54  ;;  %1643 = vmatpush.bf16.msrb.mxu1 %v1563_v46  ;;  %v1561_v43 = vpack.c.bf16 %v1463_v36, %v1461_v53  ;;  %vm4166_vm8 = vmmov %vm4163_vm3  ;;  %v4169_v54 = vpack.c.bf16 %v4167_v23, %v4168_v35  ;;  %v2455_v12 = vunpack.i.h.bf16 %v3864_v22 }
 0x4ef   :  { %1652 = vmatpush.bf16.msrb.mxu2 %v1587_v52  ;;  %v1502_v40 = vsel %vm4164_vm9, %v2480_v51, %v2469_v56  ;;  %v1507_v32 = vsel %vm4166_vm8, %v2464_v0, %v2465_v15  ;;  %vm4170_vm14 = vmmov %vm4163_vm3 }
 0x4f0   :  { %1817 = vmatmul.msk.bf16.vlgmr.msra.gmra.mxu2 %vm818_vm12, %v1595_v28  ;;  %v2448_v29 = vpop.permute.xlu1 %2447  ;;  %vm4172_vm6 = vmmov %vm4163_vm3 }
 0x4f1   :  { %v2450_v63 = vunpack.i.h.bf16 %v2448_v29  ;;  %v2449_v47 = vunpack.i.l.bf16 %v2448_v29  ;;  %v1501_v2 = vsel %vm4172_vm6, %v2454_v41, %v2455_v12 }
 0x4f2   :  { %1644 = vmatpush.bf16.msrb.mxu1 %v1561_v43 }
 0x4f3   :  { %1653 = vmatpush.bf16.msrb.mxu2 %v4150_v30  ;;  %v1413_v50 = vsel %vm4134_vm1, %v2300_v45, %v2449_v47  ;;  %v1415_v48 = vsel %vm4151_vm5, %v2335_v42, %v2450_v63  ;;  %v1321_v42 = vsel %vm4155_vm4, %v2384_v10, %v2385_v61  ;;  %v2429_v45 = vunpack.i.l.bf16 %v3814_v38 }
 0x4f4   :  { %v1852_v16 = vpack.c.bf16 %v1415_v48, %v1413_v50  ;;  %v1843_v24 = vpack.c.bf16 %v1323_v3, %v1321_v42  ;;  %v2479_v10 = vunpack.i.l.bf16 %v2478_v21 }
 0x4f5   :  { %v1505_v9 = vsel %vm4170_vm14, %v2429_v45, %v2430_v25 }
 0x4f6   :  { %1832 = vmatpush.bf16.msk.msrb.mxu1 %vm3070_vm15, %v4153_v7  ;;  %1853 = vmatpush.bf16.msk.msrb.mxu3 %vm3140_vm11, %v1852_v16  ;;  %v1575_v52 = vpack.c.bf16 %v1507_v32, %v1505_v9 }
 0x4f7   :  { %1838 = vmatpush.bf16.msk.msrb.mxu2 %vm3070_vm15, %v1837_v57 }
 0x4f8   :  { %v2473_v60 = vpop.permute.xlu1 %2472 }
 0x4f9   :  { %v2475_v11 = vunpack.i.h.bf16 %v2473_v60  ;;  %v2474_v34 = vunpack.i.l.bf16 %v2473_v60 }
 0x4fa   :  { %1835 = vmatpush.bf16.msk.msrb.mxu1 %vm3070_vm15, %v4161_v17 }
 0x4fb   :  { %1841 = vmatpush.bf16.msk.msrb.mxu2 %vm3070_vm15, %v4158_v14  ;;  %v1504_v62 = vsel %vm4162_vm10, %v2474_v34, %v2429_v45  ;;  %v1506_v58 = vsel %vm4163_vm3, %v2475_v11, %v2464_v0  ;;  %vm4165_vm15 = vmmov %vm4163_vm3 }
 0x4fc   :  { %v1574_v20 = vpack.c.bf16 %v1506_v58, %v1504_v62  ;;  %v1500_v49 = vsel %vm4165_vm15, %v2479_v10, %v2454_v41 }
 0x4fd   :  { %1647 = vmatmul.bf16.vlgmr.msrb.gmra.mxu1 %v1593_v26  ;;  %1854 = vmatmul.msk.bf16.vlgmr.msrb.gmra.mxu3 %vm818_vm12, %v1595_v28  ;;  %v1572_v38 = vpack.c.bf16 %v1502_v40, %v1500_v49  ;;  %vm4171_vm12 = vmmov %vm4163_vm3 }
 0x4fe   :  { %1619 = vmatpush.bf16.msrb.mxu0 %v1574_v20  ;;  %v1503_v26 = vsel %vm4171_vm12, %v2469_v56, %v2470_v19 }
 0x4ff   :  { %1844 = vmatpush.bf16.msk.msrb.mxu2 %vm3140_vm11, %v1843_v24  ;;  %v1573_v44 = vpack.c.bf16 %v1503_v26, %v1501_v2 }
 0x502   :  { %1620 = vmatpush.bf16.msrb.mxu0 %v1572_v38 }
 0x503   :  { %1847 = vmatpush.bf16.msk.msrb.mxu2 %vm3140_vm11, %v4169_v54 }
 0x505   :  { %1621 = vmatmul.bf16.vlgmr.msrb.gmra.mxu0 %v1594_v55 }
 0x507   :  { %1658 = vmatpush.bf16.msrb.mxu2 %v1575_v52 }
 0x50b   :  { %1659 = vmatpush.bf16.msrb.mxu2 %v1573_v44 }
 0x50e   :  { %1660 = vmatmul.bf16.vlgmr.msrb.gmra.mxu2 %v1594_v55 }
 0x570   :  { %v1609_v18 = vpop.f32.mrf.mxu3 }
 0x571   :  { %v1610_v30 = vadd.f32 %v1609_v18, %v4173_v37 }
 0x573   :  { %v1635_v1 = vpop.f32.mrf.mxu2 }
 0x578   :  { %v1611_v59 = vpop.f32.mrf.mxu3 }
 0x57a   :  { %v1648_v5 = vpop.f32.mrf.mxu1 }
 0x57b   :  { %v1637_v28 = vpop.f32.mrf.mxu2  ;;  %v1649_v29 = vadd.f32 %v1648_v5, %v4173_v37 }
 0x580   :  { %v1674_v46 = vpop.f32.mrf.mxu3 }
 0x582   :  { %v1622_v22 = vpop.f32.mrf.mxu0  ;;  %v1650_v53 = vpop.f32.mrf.mxu1 }
 0x583   :  { %v1623_v63 = vadd.f32 %v1622_v22, %v1610_v30 }
 0x585   :  { %v1636_v8 = vadd.f32 %v1635_v1, %v1623_v63 }
 0x588   :  { %v1676_v36 = vpop.f32.mrf.mxu3 }
 0x58a   :  { %v1624_v27 = vpop.f32.mrf.mxu0 }
 0x591   :  { %v1661_v43 = vpop.f32.mrf.mxu2 }
 0x592   :  { %v1662_v47 = vadd.f32 %v1661_v43, %v1649_v29 }
 0x594   :  { %v1675_v57 = vadd.f32 %v1674_v46, %v1662_v47 }
 0x596   :  { %v1680_v50 = vrot.slane %v1675_v57, 6 }
 0x598   :  { %v1681_v48 = vsel %vm223_vm13, %v1636_v8, %v1680_v50 }
 0x599   :  { %1855 = vst [vmem:[%s3946_s5 + $0x4] sm:$0xf] %v1681_v48  ;;  %v1663_v61 = vpop.f32.mrf.mxu2 }

</bundles_post_ra>
